<compile_context>
chip_gen: v7x
topology: tpu7x:2x2x1
jax: 0.10.0
libtpu: 0.0.40
codegen_flags: <defaults>
</compile_context>

<pallas_src>
import functools

import jax
import jax.numpy as jnp
from jax.experimental import pallas as pl
from jax.experimental.pallas import tpu as pltpu


VMEM_LIMIT = 32 * 1024 * 1024  # safe on v5e/v6e (128 MiB) and v7x (64 MiB)


def _pick_tile(n, candidates=(1024, 512, 256, 128)):
    for c in candidates:
        if n % c == 0:
            return c
    return n


# ----------------------------------------------------------------------------
# GEMM kernel:  out = A @ [silu](X) + bias (+ add)
#   A: (M, K) weights (bf16), X: (K, N) activations (bf16), lane-dense output.
# ----------------------------------------------------------------------------
def _matmul_kernel(*refs, silu_rhs, has_add):
    if has_add:
        a_ref, x_ref, bias_ref, add_ref, o_ref = refs
    else:
        a_ref, x_ref, bias_ref, o_ref = refs
        add_ref = None
    x = x_ref[...]
    if silu_rhs:                          # fused nn.SiLU() before nn.Linear (t_emb path)
        xf = x.astype(jnp.float32)
        x = (xf * jax.nn.sigmoid(xf)).astype(jnp.bfloat16)
    acc = jnp.dot(a_ref[...], x, preferred_element_type=jnp.float32)
    acc = acc + bias_ref[...]
    if has_add:
        acc = acc + add_ref[...]
    o_ref[...] = acc.astype(o_ref.dtype)


def matmul_cf(a, x, bias, *, add=None, silu_rhs=False):
    """out = a @ [silu](x) + bias[:,None] (+ add); a:(M,K), x:(K,N) -> (M,N)."""
    M, K = a.shape
    K2, N = x.shape
    assert K == K2
    tn = _pick_tile(N)
    grid = (N // tn,)

    a_in = a.astype(jnp.bfloat16)
    x_in = x if silu_rhs else x.astype(jnp.bfloat16)
    ins = [a_in, x_in, bias.astype(jnp.float32).reshape(M, 1)]
    in_specs = [
        pl.BlockSpec((M, K), lambda j: (0, 0)),
        pl.BlockSpec((K, tn), lambda j: (0, j)),
        pl.BlockSpec((M, 1), lambda j: (0, 0)),
    ]
    if add is not None:
        ins.append(add.astype(jnp.float32).reshape(M, N))
        in_specs.append(pl.BlockSpec((M, tn), lambda j: (0, j)))

    kernel = functools.partial(_matmul_kernel, silu_rhs=silu_rhs,
                               has_add=add is not None)
    return pl.pallas_call(
        kernel,
        out_shape=jax.ShapeDtypeStruct((M, N), jnp.float32),
        grid=grid,
        in_specs=in_specs,
        out_specs=pl.BlockSpec((M, tn), lambda j: (0, j)),
        compiler_params=pltpu.CompilerParams(
            dimension_semantics=("parallel",),
            vmem_limit_bytes=VMEM_LIMIT),
    )(*ins)


# ----------------------------------------------------------------------------
# GroupNorm kernel (channels-first layout), optional fused SiLU and fused
# per-(batch, channel) t_emb add.  Grid over groups; gamma/beta stay tiny.
# ----------------------------------------------------------------------------
def _groupnorm_kernel(*refs, eps, silu, has_t):
    if has_t:
        x_ref, g_ref, b_ref, t_ref, o_ref = refs
    else:
        x_ref, g_ref, b_ref, o_ref = refs
        t_ref = None
    x = x_ref[0].astype(jnp.float32)                   # (cg, B, L)
    if has_t:
        x = x + t_ref[0]                               # (cg, B, 1) broadcast over L
    # two-pass mean / variance (avoids E[x^2]-E[x]^2 cancellation)
    mean = jnp.mean(jnp.mean(x, axis=2, keepdims=True), axis=0, keepdims=True)
    d = x - mean
    var = jnp.mean(jnp.mean(d * d, axis=2, keepdims=True), axis=0, keepdims=True)
    y = d * jax.lax.rsqrt(var + eps)
    y = y * g_ref[0] + b_ref[0]                        # (cg,1,1) per-channel affine
    if silu:
        y = y * jax.nn.sigmoid(y)
    o_ref[0] = y.astype(o_ref.dtype)


def group_norm_cf(x_cf, gamma, beta, num_groups, *, eps=1e-5, silu=False, t_add=None):
    """GroupNorm on (C, B, H, W) activations; t_add (C, B) is added before the norm."""
    C, B, H, W = x_cf.shape
    G = num_groups
    cg = C // G
    L = H * W
    xr = x_cf.reshape(G, cg, B, L)
    g = gamma.astype(jnp.float32).reshape(G, cg, 1, 1)
    bt = beta.astype(jnp.float32).reshape(G, cg, 1, 1)

    ins = [xr, g, bt]
    in_specs = [
        pl.BlockSpec((1, cg, B, L), lambda i: (i, 0, 0, 0)),
        pl.BlockSpec((1, cg, 1, 1), lambda i: (i, 0, 0, 0)),
        pl.BlockSpec((1, cg, 1, 1), lambda i: (i, 0, 0, 0)),
    ]
    if t_add is not None:
        ins.append(t_add.astype(jnp.float32).reshape(G, cg, B, 1))
        in_specs.append(pl.BlockSpec((1, cg, B, 1), lambda i: (i, 0, 0, 0)))

    kernel = functools.partial(_groupnorm_kernel, eps=eps, silu=silu,
                               has_t=t_add is not None)
    y = pl.pallas_call(
        kernel,
        out_shape=jax.ShapeDtypeStruct((G, cg, B, L), jnp.float32),
        grid=(G,),
        in_specs=in_specs,
        out_specs=pl.BlockSpec((1, cg, B, L), lambda i: (i, 0, 0, 0)),
        compiler_params=pltpu.CompilerParams(
            dimension_semantics=("parallel",),
            vmem_limit_bytes=VMEM_LIMIT),
    )(*ins)
    return y.reshape(C, B, H, W)


# ----------------------------------------------------------------------------
# Flash-style attention: q,k,v in (B*heads, hd, S) layout, KV-tiled online
# softmax, lane-dense (hd, tq) output tiles, EUP reciprocal for the denom.
# ----------------------------------------------------------------------------
def _flash_kernel(q_ref, k_ref, v_ref, o_ref, m_sc, l_sc, acc_sc, *, scale):
    ki = pl.program_id(2)

    @pl.when(ki == 0)
    def _():
        m_sc[...] = jnp.full_like(m_sc, -jnp.inf)
        l_sc[...] = jnp.zeros_like(l_sc)
        acc_sc[...] = jnp.zeros_like(acc_sc)

    q = q_ref[0] * scale                               # (hd, tq) bf16
    k = k_ref[0]                                       # (hd, tk)
    v = v_ref[0]                                       # (hd, tk)
    # scores^T : (tk, tq), softmax runs along axis 0 so stats are (1, tq)
    s = jax.lax.dot_general(k, q, (((0,), (0,)), ((), ())),
                            preferred_element_type=jnp.float32)
    m_prev = m_sc[...]
    m_cur = jnp.max(s, axis=0, keepdims=True)
    m_new = jnp.maximum(m_prev, m_cur)
    alpha = jnp.exp(m_prev - m_new)
    p = jnp.exp(s - m_new)                             # (tk, tq)
    l_sc[...] = alpha * l_sc[...] + jnp.sum(p, axis=0, keepdims=True)
    acc_sc[...] = alpha * acc_sc[...] + jnp.dot(v, p.astype(v.dtype),
                                                preferred_element_type=jnp.float32)
    m_sc[...] = m_new

    @pl.when(ki == pl.num_programs(2) - 1)
    def _():
        o_ref[0] = (acc_sc[...] *
                    pl.reciprocal(l_sc[...], approx=True)).astype(o_ref.dtype)


def sdpa_cf(q, k, v):
    """q,k,v: (B*heads, hd, S) bf16 -> (B*heads, hd, S) f32."""
    BH, hd, S = q.shape
    scale = 1.0 / float(hd) ** 0.5
    tq = 128 if S % 128 == 0 else S
    tk = tq
    nq, nk = S // tq, S // tk

    kernel = functools.partial(_flash_kernel, scale=scale)
    q_spec = pl.BlockSpec((1, hd, tq), lambda b, qi, ki: (b, 0, qi))
    kv_spec = pl.BlockSpec((1, hd, tk), lambda b, qi, ki: (b, 0, ki))
    o_spec = pl.BlockSpec((1, hd, tq), lambda b, qi, ki: (b, 0, qi))
    return pl.pallas_call(
        kernel,
        out_shape=jax.ShapeDtypeStruct((BH, hd, S), jnp.float32),
        grid=(BH, nq, nk),
        in_specs=[q_spec, kv_spec, kv_spec],
        out_specs=o_spec,
        scratch_shapes=[pltpu.VMEM((1, tq), jnp.float32),
                        pltpu.VMEM((1, tq), jnp.float32),
                        pltpu.VMEM((hd, tq), jnp.float32)],
        compiler_params=pltpu.CompilerParams(
            dimension_semantics=("parallel", "parallel", "arbitrary"),
            vmem_limit_bytes=VMEM_LIMIT),
    )(q, k, v)


# ----------------------------------------------------------------------------
# Conv / attention wrappers (im2col glue in plain JAX; GEMMs in Pallas)
# ----------------------------------------------------------------------------
def conv3x3_cf(x_cf, w, b, add=None):
    """3x3, stride 1, pad 1 conv in channels-first layout. w:(Co,Ci,3,3)."""
    C, B, H, W = x_cf.shape
    Co = w.shape[0]
    xp = jnp.pad(x_cf, ((0, 0), (0, 0), (1, 1), (1, 1)))
    cols = [xp[:, :, ky:ky + H, kx:kx + W] for ky in range(3) for kx in range(3)]
    patches = jnp.stack(cols, axis=1).reshape(C * 9, B * H * W)   # (Ci*9, B*HW)
    wmat = w.reshape(Co, C * 9)
    y = matmul_cf(wmat, patches, b, add=add)                      # (Co, B*HW)
    return y.reshape(Co, B, H, W)


def multihead_attention_cf(p, normed_cf, skip_cf, num_heads):
    """Self-attention on (E, B, H, W) normed input, skip add fused into out-proj."""
    E, B, H, W = normed_cf.shape
    S = H * W
    hd = E // num_heads

    x_flat = normed_cf.reshape(E, B * S)
    qkv = matmul_cf(p["in_w"], x_flat, p["in_b"])                 # (3E, B*S)
    q, k, v = qkv[:E], qkv[E:2 * E], qkv[2 * E:]

    def split_heads(t):                                           # (E,B*S)->(BH,hd,S)
        t = t.reshape(num_heads, hd, B, S)
        t = jnp.transpose(t, (2, 0, 1, 3)).reshape(B * num_heads, hd, S)
        return t.astype(jnp.bfloat16)

    o = sdpa_cf(split_heads(q), split_heads(k), split_heads(v))   # (BH, hd, S)
    o = o.reshape(B, num_heads, hd, S)
    o = jnp.transpose(o, (1, 2, 0, 3)).reshape(E, B * S)
    out = matmul_cf(p["out_w"], o, p["out_b"], add=skip_cf.reshape(E, B * S))
    return out.reshape(E, B, H, W)


# ----------------------------------------------------------------------------
# MidBlock parameters + forward
# ----------------------------------------------------------------------------
def init_params(key, in_ch, out_ch, t_emb_dim, num_layers, num_heads):
    keys = iter(jax.random.split(key, 512))

    def nrm(shape, scale=0.1):
        return scale * jax.random.normal(next(keys), shape, jnp.float32)

    resnets = []
    for i in range(num_layers + 1):
        ci = in_ch if i == 0 else out_ch
        blk = {
            "gn1_g": 1.0 + nrm((ci,)), "gn1_b": nrm((ci,)),
            "conv1_w": nrm((out_ch, ci, 3, 3)), "conv1_b": nrm((out_ch,)),
            "gn2_g": 1.0 + nrm((out_ch,)), "gn2_b": nrm((out_ch,)),
            "conv2_w": nrm((out_ch, out_ch, 3, 3)), "conv2_b": nrm((out_ch,)),
            "res_w": nrm((out_ch, ci, 1, 1)), "res_b": nrm((out_ch,)),
        }
        if t_emb_dim is not None:
            blk["t_w"] = nrm((out_ch, t_emb_dim))   # nn.Linear weight (out, in)
            blk["t_b"] = nrm((out_ch,))
        resnets.append(blk)

    attns = []
    for _ in range(num_layers):
        attns.append({
            "gn_g": 1.0 + nrm((out_ch,)), "gn_b": nrm((out_ch,)),
            "in_w": nrm((3 * out_ch, out_ch)), "in_b": nrm((3 * out_ch,)),
            "out_w": nrm((out_ch, out_ch)), "out_b": nrm((out_ch,)),
        })
    return {"resnets": resnets, "attns": attns}


def resnet_block_cf(p, x_cf, t_emb, norm_channels):
    Ci, B, H, W = x_cf.shape
    Co = p["conv1_w"].shape[0]
    N = B * H * W

    # GroupNorm + SiLU + Conv3x3 (first)
    h = group_norm_cf(x_cf, p["gn1_g"], p["gn1_b"], norm_channels, silu=True)
    h = conv3x3_cf(h, p["conv1_w"], p["conv1_b"])

    # t-embedding: SiLU + Linear -> (Co, B); broadcast add fused into GroupNorm2.
    t_col = None
    if (t_emb is not None) and ("t_w" in p):
        t_col = matmul_cf(p["t_w"], jnp.transpose(t_emb), p["t_b"], silu_rhs=True)

    # 1x1 residual conv as a GEMM; its add is fused into conv2's epilogue.
    res = matmul_cf(p["res_w"].reshape(Co, Ci), x_cf.reshape(Ci, N), p["res_b"])

    # GroupNorm(+t add) + SiLU + Conv3x3 (second, residual add fused)
    h = group_norm_cf(h, p["gn2_g"], p["gn2_b"], norm_channels,
                      silu=True, t_add=t_col)
    out = conv3x3_cf(h, p["conv2_w"], p["conv2_b"], add=res)
    return out


def mid_block_forward(params, x, t_emb=None, *, num_layers, norm_channels,
                      num_heads, t_emb_dim):
    # to channels-first-major layout (C, B, H, W) once; back at the end.
    out = jnp.transpose(x, (1, 0, 2, 3))
    t = t_emb if t_emb_dim is not None else None

    out = resnet_block_cf(params["resnets"][0], out, t, norm_channels)
    for i in range(num_layers):
        pa = params["attns"][i]
        normed = group_norm_cf(out, pa["gn_g"], pa["gn_b"], norm_channels, silu=False)
        out = multihead_attention_cf(pa, normed, out, num_heads)   # skip add fused
        out = resnet_block_cf(params["resnets"][i + 1], out, t, norm_channels)

    return jnp.transpose(out, (1, 0, 2, 3))


if __name__ == "__main__":
    in_channels, out_channels = 8, 8
    t_emb_dim = 16
    num_heads = 2
    num_layers = 1
    norm_channels = 4
    B, H, W = 2, 16, 16

    key = jax.random.PRNGKey(0)
    kx, kt, kp = jax.random.split(key, 3)
    x = jax.random.normal(kx, (B, in_channels, H, W), jnp.float32)
    t_emb = jax.random.normal(kt, (B, t_emb_dim), jnp.float32)
    params = init_params(kp, in_channels, out_channels, t_emb_dim,
                         num_layers, num_heads)

    fwd = jax.jit(functools.partial(mid_block_forward,
                                    num_layers=num_layers,
                                    norm_channels=norm_channels,
                                    num_heads=num_heads,
                                    t_emb_dim=t_emb_dim))
    out = fwd(params, x, t_emb)
    out = jax.block_until_ready(out)
    assert out.shape == (B, out_channels, H, W), out.shape
    assert bool(jnp.all(jnp.isfinite(out)))
    print("KERNEL_OK")
</pallas_src>

<mosaic_0001>
module attributes {stable_mosaic.version = 11 : i64} {
  func.func @_groupnorm_kernel(%arg0: i32, %arg1: memref<1x2x2x256xf32, #tpu.memory_space<vmem>>, %arg2: memref<1x2x1x1xf32, #tpu.memory_space<vmem>>, %arg3: memref<1x2x1x1xf32, #tpu.memory_space<vmem>>, %arg4: memref<1x2x2x256xf32, #tpu.memory_space<vmem>>) attributes {dimension_semantics = [#tpu.dimension_semantics<parallel>], iteration_bounds = array<i64: 4>, scalar_prefetch = 0 : i64, scratch_operands = 0 : i64, tpu.core_type = #tpu.core_type<tc>, window_params = [{transform_indices = @transform_0, window_bounds = array<i64: 1, 2, 2, 256>}, {transform_indices = @transform_1, window_bounds = array<i64: 1, 2, 1, 1>}, {transform_indices = @transform_2, window_bounds = array<i64: 1, 2, 1, 1>}, {transform_indices = @transform_3, window_bounds = array<i64: 1, 2, 2, 256>}]} {
    %c0 = arith.constant 0 : index
    %c0_0 = arith.constant 0 : index
    %c0_1 = arith.constant 0 : index
    %c0_2 = arith.constant 0 : index
    %0 = vector.load %arg1[%c0, %c0_0, %c0_1, %c0_2] : memref<1x2x2x256xf32, #tpu.memory_space<vmem>>, vector<1x2x2x256xf32>
    %1 = vector.shape_cast %0 : vector<1x2x2x256xf32> to vector<2x2x256xf32>
    %cst = arith.constant dense<0.000000e+00> : vector<2x2xf32>
    %2 = vector.multi_reduction <add>, %1, %cst [2] : vector<2x2x256xf32> to vector<2x2xf32>
    %3 = vector.shape_cast %2 : vector<2x2xf32> to vector<2x2x1xf32>
    %cst_3 = arith.constant 2.560000e+02 : f32
    %4 = vector.broadcast %cst_3 : f32 to vector<2x2x1xf32>
    %5 = arith.divf %3, %4 : vector<2x2x1xf32>
    %cst_4 = arith.constant dense<0.000000e+00> : vector<2x1xf32>
    %6 = vector.multi_reduction <add>, %5, %cst_4 [0] : vector<2x2x1xf32> to vector<2x1xf32>
    %7 = vector.shape_cast %6 : vector<2x1xf32> to vector<1x2x1xf32>
    %cst_5 = arith.constant 2.000000e+00 : f32
    %8 = vector.broadcast %cst_5 : f32 to vector<1x2x1xf32>
    %9 = arith.divf %7, %8 : vector<1x2x1xf32>
    %10 = vector.broadcast %9 : vector<1x2x1xf32> to vector<2x2x256xf32>
    %11 = arith.subf %1, %10 : vector<2x2x256xf32>
    %12 = arith.mulf %11, %11 : vector<2x2x256xf32>
    %cst_6 = arith.constant dense<0.000000e+00> : vector<2x2xf32>
    %13 = vector.multi_reduction <add>, %12, %cst_6 [2] : vector<2x2x256xf32> to vector<2x2xf32>
    %14 = vector.shape_cast %13 : vector<2x2xf32> to vector<2x2x1xf32>
    %cst_7 = arith.constant 2.560000e+02 : f32
    %15 = vector.broadcast %cst_7 : f32 to vector<2x2x1xf32>
    %16 = arith.divf %14, %15 : vector<2x2x1xf32>
    %cst_8 = arith.constant dense<0.000000e+00> : vector<2x1xf32>
    %17 = vector.multi_reduction <add>, %16, %cst_8 [0] : vector<2x2x1xf32> to vector<2x1xf32>
    %18 = vector.shape_cast %17 : vector<2x1xf32> to vector<1x2x1xf32>
    %cst_9 = arith.constant 2.000000e+00 : f32
    %19 = vector.broadcast %cst_9 : f32 to vector<1x2x1xf32>
    %20 = arith.divf %18, %19 : vector<1x2x1xf32>
    %cst_10 = arith.constant 9.99999974E-6 : f32
    %21 = vector.broadcast %cst_10 : f32 to vector<1x2x1xf32>
    %22 = arith.addf %20, %21 : vector<1x2x1xf32>
    %23 = math.rsqrt %22 : vector<1x2x1xf32>
    %24 = vector.broadcast %23 : vector<1x2x1xf32> to vector<2x2x256xf32>
    %25 = arith.mulf %11, %24 : vector<2x2x256xf32>
    %c0_11 = arith.constant 0 : index
    %c0_12 = arith.constant 0 : index
    %c0_13 = arith.constant 0 : index
    %c0_14 = arith.constant 0 : index
    %26 = vector.load %arg2[%c0_11, %c0_12, %c0_13, %c0_14] : memref<1x2x1x1xf32, #tpu.memory_space<vmem>>, vector<1x2x1x1xf32>
    %27 = vector.shape_cast %26 : vector<1x2x1x1xf32> to vector<2x1x1xf32>
    %28 = vector.broadcast %27 : vector<2x1x1xf32> to vector<2x2x256xf32>
    %29 = arith.mulf %25, %28 : vector<2x2x256xf32>
    %c0_15 = arith.constant 0 : index
    %c0_16 = arith.constant 0 : index
    %c0_17 = arith.constant 0 : index
    %c0_18 = arith.constant 0 : index
    %30 = vector.load %arg3[%c0_15, %c0_16, %c0_17, %c0_18] : memref<1x2x1x1xf32, #tpu.memory_space<vmem>>, vector<1x2x1x1xf32>
    %31 = vector.shape_cast %30 : vector<1x2x1x1xf32> to vector<2x1x1xf32>
    %32 = vector.broadcast %31 : vector<2x1x1xf32> to vector<2x2x256xf32>
    %33 = arith.addf %29, %32 : vector<2x2x256xf32>
    %34 = arith.negf %33 : vector<2x2x256xf32>
    %35 = math.exp %34 : vector<2x2x256xf32>
    %cst_19 = arith.constant 1.000000e+00 : f32
    %36 = vector.broadcast %cst_19 : f32 to vector<2x2x256xf32>
    %37 = arith.addf %36, %35 : vector<2x2x256xf32>
    %38 = arith.divf %36, %37 : vector<2x2x256xf32>
    %39 = arith.mulf %33, %38 : vector<2x2x256xf32>
    %c0_20 = arith.constant 0 : index
    %c0_21 = arith.constant 0 : index
    %c0_22 = arith.constant 0 : index
    %c0_23 = arith.constant 0 : index
    %40 = vector.load %arg4[%c0_20, %c0_21, %c0_22, %c0_23] : memref<1x2x2x256xf32, #tpu.memory_space<vmem>>, vector<1x2x2x256xf32>
    %41 = vector.shape_cast %40 : vector<1x2x2x256xf32> to vector<2x2x256xf32>
    %42 = vector.shape_cast %39 : vector<2x2x256xf32> to vector<1x2x2x256xf32>
    tpu.vector_store %arg4[%c0_20, %c0_21, %c0_22, %c0_23], %42 {strides = array<i32>} : memref<1x2x2x256xf32, #tpu.memory_space<vmem>>, vector<1x2x2x256xf32>,
    return
  }
  func.func @transform_0(%arg0: i32) -> (i32, i32, i32, i32) {
    %c0_i32 = arith.constant 0 : i32
    %c0_i32_0 = arith.constant 0 : i32
    %c0_i32_1 = arith.constant 0 : i32
    %c0_i32_2 = arith.constant 0 : i32
    return %arg0, %c0_i32, %c0_i32_0, %c0_i32_1 : i32, i32, i32, i32
  }
  func.func @transform_1(%arg0: i32) -> (i32, i32, i32, i32) {
    %c0_i32 = arith.constant 0 : i32
    %c0_i32_0 = arith.constant 0 : i32
    %c0_i32_1 = arith.constant 0 : i32
    %c0_i32_2 = arith.constant 0 : i32
    return %arg0, %c0_i32, %c0_i32_0, %c0_i32_1 : i32, i32, i32, i32
  }
  func.func @transform_2(%arg0: i32) -> (i32, i32, i32, i32) {
    %c0_i32 = arith.constant 0 : i32
    %c0_i32_0 = arith.constant 0 : i32
    %c0_i32_1 = arith.constant 0 : i32
    %c0_i32_2 = arith.constant 0 : i32
    return %arg0, %c0_i32, %c0_i32_0, %c0_i32_1 : i32, i32, i32, i32
  }
  func.func @transform_3(%arg0: i32) -> (i32, i32, i32, i32) {
    %c0_i32 = arith.constant 0 : i32
    %c0_i32_0 = arith.constant 0 : i32
    %c0_i32_1 = arith.constant 0 : i32
    %c0_i32_2 = arith.constant 0 : i32
    return %arg0, %c0_i32, %c0_i32_0, %c0_i32_1 : i32, i32, i32, i32
  }
}

module attributes {stable_mosaic.version = 11 : i64} {
  func.func @_matmul_kernel(%arg0: i32, %arg1: memref<8x72xbf16, #tpu.memory_space<vmem>>, %arg2: memref<72x512xbf16, #tpu.memory_space<vmem>>, %arg3: memref<8x1xf32, #tpu.memory_space<vmem>>, %arg4: memref<8x512xf32, #tpu.memory_space<vmem>>) attributes {dimension_semantics = [#tpu.dimension_semantics<parallel>], iteration_bounds = array<i64: 1>, scalar_prefetch = 0 : i64, scratch_operands = 0 : i64, tpu.core_type = #tpu.core_type<tc>, window_params = [{pipeline_mode = #tpu.pipeline_mode<synchronous>, transform_indices = @transform_0, window_bounds = array<i64: 8, 72>}, {transform_indices = @transform_1, window_bounds = array<i64: 72, 512>}, {pipeline_mode = #tpu.pipeline_mode<synchronous>, transform_indices = @transform_2, window_bounds = array<i64: 8, 1>}, {transform_indices = @transform_3, window_bounds = array<i64: 8, 512>}]} {
    %c0 = arith.constant 0 : index
    %c0_0 = arith.constant 0 : index
    %0 = vector.load %arg2[%c0, %c0_0] : memref<72x512xbf16, #tpu.memory_space<vmem>>, vector<72x512xbf16>
    %c0_1 = arith.constant 0 : index
    %c0_2 = arith.constant 0 : index
    %1 = vector.load %arg1[%c0_1, %c0_2] : memref<8x72xbf16, #tpu.memory_space<vmem>>, vector<8x72xbf16>
    %cst = arith.constant dense<0.000000e+00> : vector<8x512xf32>
    %2 = tpu.matmul %1, %0, %cst {dimension_numbers = #tpu.dot_dimension_numbers<[1], [0], [0], [1], [0, 0, 1, 1], [], []>} : vector<8x72xbf16>, vector<72x512xbf16>, vector<8x512xf32> -> vector<8x512xf32>
    %c0_3 = arith.constant 0 : index
    %c0_4 = arith.constant 0 : index
    %3 = vector.load %arg3[%c0_3, %c0_4] : memref<8x1xf32, #tpu.memory_space<vmem>>, vector<8x1xf32>
    %4 = vector.broadcast %3 : vector<8x1xf32> to vector<8x512xf32>
    %5 = arith.addf %2, %4 : vector<8x512xf32>
    %c0_5 = arith.constant 0 : index
    %c0_6 = arith.constant 0 : index
    %6 = vector.load %arg4[%c0_5, %c0_6] : memref<8x512xf32, #tpu.memory_space<vmem>>, vector<8x512xf32>
    tpu.vector_store %arg4[%c0_5, %c0_6], %5 {strides = array<i32>} : memref<8x512xf32, #tpu.memory_space<vmem>>, vector<8x512xf32>,
    return
  }
  func.func @transform_0(%arg0: i32) -> (i32, i32) {
    %c0_i32 = arith.constant 0 : i32
    %c0_i32_0 = arith.constant 0 : i32
    %c0_i32_1 = arith.constant 0 : i32
    return %c0_i32, %c0_i32_0 : i32, i32
  }
  func.func @transform_1(%arg0: i32) -> (i32, i32) {
    %c0_i32 = arith.constant 0 : i32
    %c0_i32_0 = arith.constant 0 : i32
    return %c0_i32, %arg0 : i32, i32
  }
  func.func @transform_2(%arg0: i32) -> (i32, i32) {
    %c0_i32 = arith.constant 0 : i32
    %c0_i32_0 = arith.constant 0 : i32
    %c0_i32_1 = arith.constant 0 : i32
    return %c0_i32, %c0_i32_0 : i32, i32
  }
  func.func @transform_3(%arg0: i32) -> (i32, i32) {
    %c0_i32 = arith.constant 0 : i32
    %c0_i32_0 = arith.constant 0 : i32
    return %c0_i32, %arg0 : i32, i32
  }
}

module attributes {stable_mosaic.version = 11 : i64} {
  func.func @_matmul_kernel(%arg0: i32, %arg1: memref<8x16xbf16, #tpu.memory_space<vmem>>, %arg2: memref<16x2xf32, #tpu.memory_space<vmem>>, %arg3: memref<8x1xf32, #tpu.memory_space<vmem>>, %arg4: memref<8x2xf32, #tpu.memory_space<vmem>>) attributes {dimension_semantics = [#tpu.dimension_semantics<parallel>], iteration_bounds = array<i64: 1>, scalar_prefetch = 0 : i64, scratch_operands = 0 : i64, tpu.core_type = #tpu.core_type<tc>, window_params = [{pipeline_mode = #tpu.pipeline_mode<synchronous>, transform_indices = @transform_0, window_bounds = array<i64: 8, 16>}, {transform_indices = @transform_1, window_bounds = array<i64: 16, 2>}, {pipeline_mode = #tpu.pipeline_mode<synchronous>, transform_indices = @transform_2, window_bounds = array<i64: 8, 1>}, {transform_indices = @transform_3, window_bounds = array<i64: 8, 2>}]} {
    %c0 = arith.constant 0 : index
    %c0_0 = arith.constant 0 : index
    %0 = vector.load %arg2[%c0, %c0_0] : memref<16x2xf32, #tpu.memory_space<vmem>>, vector<16x2xf32>
    %1 = arith.negf %0 : vector<16x2xf32>
    %2 = math.exp %1 : vector<16x2xf32>
    %cst = arith.constant 1.000000e+00 : f32
    %3 = vector.broadcast %cst : f32 to vector<16x2xf32>
    %4 = arith.addf %3, %2 : vector<16x2xf32>
    %5 = arith.divf %3, %4 : vector<16x2xf32>
    %6 = arith.mulf %0, %5 : vector<16x2xf32>
    %7 = arith.truncf %6 : vector<16x2xf32> to vector<16x2xbf16>
    %c0_1 = arith.constant 0 : index
    %c0_2 = arith.constant 0 : index
    %8 = vector.load %arg1[%c0_1, %c0_2] : memref<8x16xbf16, #tpu.memory_space<vmem>>, vector<8x16xbf16>
    %cst_3 = arith.constant dense<0.000000e+00> : vector<8x2xf32>
    %9 = tpu.matmul %8, %7, %cst_3 {dimension_numbers = #tpu.dot_dimension_numbers<[1], [0], [0], [1], [0, 0, 1, 1], [], []>} : vector<8x16xbf16>, vector<16x2xbf16>, vector<8x2xf32> -> vector<8x2xf32>
    %c0_4 = arith.constant 0 : index
    %c0_5 = arith.constant 0 : index
    %10 = vector.load %arg3[%c0_4, %c0_5] : memref<8x1xf32, #tpu.memory_space<vmem>>, vector<8x1xf32>
    %11 = vector.broadcast %10 : vector<8x1xf32> to vector<8x2xf32>
    %12 = arith.addf %9, %11 : vector<8x2xf32>
    %c0_6 = arith.constant 0 : index
    %c0_7 = arith.constant 0 : index
    %13 = vector.load %arg4[%c0_6, %c0_7] : memref<8x2xf32, #tpu.memory_space<vmem>>, vector<8x2xf32>
    tpu.vector_store %arg4[%c0_6, %c0_7], %12 {strides = array<i32>} : memref<8x2xf32, #tpu.memory_space<vmem>>, vector<8x2xf32>,
    return
  }
  func.func @transform_0(%arg0: i32) -> (i32, i32) {
    %c0_i32 = arith.constant 0 : i32
    %c0_i32_0 = arith.constant 0 : i32
    %c0_i32_1 = arith.constant 0 : i32
    return %c0_i32, %c0_i32_0 : i32, i32
  }
  func.func @transform_1(%arg0: i32) -> (i32, i32) {
    %c0_i32 = arith.constant 0 : i32
    %c0_i32_0 = arith.constant 0 : i32
    return %c0_i32, %arg0 : i32, i32
  }
  func.func @transform_2(%arg0: i32) -> (i32, i32) {
    %c0_i32 = arith.constant 0 : i32
    %c0_i32_0 = arith.constant 0 : i32
    %c0_i32_1 = arith.constant 0 : i32
    return %c0_i32, %c0_i32_0 : i32, i32
  }
  func.func @transform_3(%arg0: i32) -> (i32, i32) {
    %c0_i32 = arith.constant 0 : i32
    %c0_i32_0 = arith.constant 0 : i32
    return %c0_i32, %arg0 : i32, i32
  }
}

module attributes {stable_mosaic.version = 11 : i64} {
  func.func @_groupnorm_kernel(%arg0: i32, %arg1: memref<1x2x2x256xf32, #tpu.memory_space<vmem>>, %arg2: memref<1x2x1x1xf32, #tpu.memory_space<vmem>>, %arg3: memref<1x2x1x1xf32, #tpu.memory_space<vmem>>, %arg4: memref<1x2x2x1xf32, #tpu.memory_space<vmem>>, %arg5: memref<1x2x2x256xf32, #tpu.memory_space<vmem>>) attributes {dimension_semantics = [#tpu.dimension_semantics<parallel>], iteration_bounds = array<i64: 4>, scalar_prefetch = 0 : i64, scratch_operands = 0 : i64, tpu.core_type = #tpu.core_type<tc>, window_params = [{transform_indices = @transform_0, window_bounds = array<i64: 1, 2, 2, 256>}, {transform_indices = @transform_1, window_bounds = array<i64: 1, 2, 1, 1>}, {transform_indices = @transform_2, window_bounds = array<i64: 1, 2, 1, 1>}, {transform_indices = @transform_3, window_bounds = array<i64: 1, 2, 2, 1>}, {transform_indices = @transform_4, window_bounds = array<i64: 1, 2, 2, 256>}]} {
    %c0 = arith.constant 0 : index
    %c0_0 = arith.constant 0 : index
    %c0_1 = arith.constant 0 : index
    %c0_2 = arith.constant 0 : index
    %0 = vector.load %arg1[%c0, %c0_0, %c0_1, %c0_2] : memref<1x2x2x256xf32, #tpu.memory_space<vmem>>, vector<1x2x2x256xf32>
    %1 = vector.shape_cast %0 : vector<1x2x2x256xf32> to vector<2x2x256xf32>
    %c0_3 = arith.constant 0 : index
    %c0_4 = arith.constant 0 : index
    %c0_5 = arith.constant 0 : index
    %c0_6 = arith.constant 0 : index
    %2 = vector.load %arg4[%c0_3, %c0_4, %c0_5, %c0_6] : memref<1x2x2x1xf32, #tpu.memory_space<vmem>>, vector<1x2x2x1xf32>
    %3 = vector.shape_cast %2 : vector<1x2x2x1xf32> to vector<2x2x1xf32>
    %4 = vector.broadcast %3 : vector<2x2x1xf32> to vector<2x2x256xf32>
    %5 = arith.addf %1, %4 : vector<2x2x256xf32>
    %cst = arith.constant dense<0.000000e+00> : vector<2x2xf32>
    %6 = vector.multi_reduction <add>, %5, %cst [2] : vector<2x2x256xf32> to vector<2x2xf32>
    %7 = vector.shape_cast %6 : vector<2x2xf32> to vector<2x2x1xf32>
    %cst_7 = arith.constant 2.560000e+02 : f32
    %8 = vector.broadcast %cst_7 : f32 to vector<2x2x1xf32>
    %9 = arith.divf %7, %8 : vector<2x2x1xf32>
    %cst_8 = arith.constant dense<0.000000e+00> : vector<2x1xf32>
    %10 = vector.multi_reduction <add>, %9, %cst_8 [0] : vector<2x2x1xf32> to vector<2x1xf32>
    %11 = vector.shape_cast %10 : vector<2x1xf32> to vector<1x2x1xf32>
    %cst_9 = arith.constant 2.000000e+00 : f32
    %12 = vector.broadcast %cst_9 : f32 to vector<1x2x1xf32>
    %13 = arith.divf %11, %12 : vector<1x2x1xf32>
    %14 = vector.broadcast %13 : vector<1x2x1xf32> to vector<2x2x256xf32>
    %15 = arith.subf %5, %14 : vector<2x2x256xf32>
    %16 = arith.mulf %15, %15 : vector<2x2x256xf32>
    %cst_10 = arith.constant dense<0.000000e+00> : vector<2x2xf32>
    %17 = vector.multi_reduction <add>, %16, %cst_10 [2] : vector<2x2x256xf32> to vector<2x2xf32>
    %18 = vector.shape_cast %17 : vector<2x2xf32> to vector<2x2x1xf32>
    %cst_11 = arith.constant 2.560000e+02 : f32
    %19 = vector.broadcast %cst_11 : f32 to vector<2x2x1xf32>
    %20 = arith.divf %18, %19 : vector<2x2x1xf32>
    %cst_12 = arith.constant dense<0.000000e+00> : vector<2x1xf32>
    %21 = vector.multi_reduction <add>, %20, %cst_12 [0] : vector<2x2x1xf32> to vector<2x1xf32>
    %22 = vector.shape_cast %21 : vector<2x1xf32> to vector<1x2x1xf32>
    %cst_13 = arith.constant 2.000000e+00 : f32
    %23 = vector.broadcast %cst_13 : f32 to vector<1x2x1xf32>
    %24 = arith.divf %22, %23 : vector<1x2x1xf32>
    %cst_14 = arith.constant 9.99999974E-6 : f32
    %25 = vector.broadcast %cst_14 : f32 to vector<1x2x1xf32>
    %26 = arith.addf %24, %25 : vector<1x2x1xf32>
    %27 = math.rsqrt %26 : vector<1x2x1xf32>
    %28 = vector.broadcast %27 : vector<1x2x1xf32> to vector<2x2x256xf32>
    %29 = arith.mulf %15, %28 : vector<2x2x256xf32>
    %c0_15 = arith.constant 0 : index
    %c0_16 = arith.constant 0 : index
    %c0_17 = arith.constant 0 : index
    %c0_18 = arith.constant 0 : index
    %30 = vector.load %arg2[%c0_15, %c0_16, %c0_17, %c0_18] : memref<1x2x1x1xf32, #tpu.memory_space<vmem>>, vector<1x2x1x1xf32>
    %31 = vector.shape_cast %30 : vector<1x2x1x1xf32> to vector<2x1x1xf32>
    %32 = vector.broadcast %31 : vector<2x1x1xf32> to vector<2x2x256xf32>
    %33 = arith.mulf %29, %32 : vector<2x2x256xf32>
    %c0_19 = arith.constant 0 : index
    %c0_20 = arith.constant 0 : index
    %c0_21 = arith.constant 0 : index
    %c0_22 = arith.constant 0 : index
    %34 = vector.load %arg3[%c0_19, %c0_20, %c0_21, %c0_22] : memref<1x2x1x1xf32, #tpu.memory_space<vmem>>, vector<1x2x1x1xf32>
    %35 = vector.shape_cast %34 : vector<1x2x1x1xf32> to vector<2x1x1xf32>
    %36 = vector.broadcast %35 : vector<2x1x1xf32> to vector<2x2x256xf32>
    %37 = arith.addf %33, %36 : vector<2x2x256xf32>
    %38 = arith.negf %37 : vector<2x2x256xf32>
    %39 = math.exp %38 : vector<2x2x256xf32>
    %cst_23 = arith.constant 1.000000e+00 : f32
    %40 = vector.broadcast %cst_23 : f32 to vector<2x2x256xf32>
    %41 = arith.addf %40, %39 : vector<2x2x256xf32>
    %42 = arith.divf %40, %41 : vector<2x2x256xf32>
    %43 = arith.mulf %37, %42 : vector<2x2x256xf32>
    %c0_24 = arith.constant 0 : index
    %c0_25 = arith.constant 0 : index
    %c0_26 = arith.constant 0 : index
    %c0_27 = arith.constant 0 : index
    %44 = vector.load %arg5[%c0_24, %c0_25, %c0_26, %c0_27] : memref<1x2x2x256xf32, #tpu.memory_space<vmem>>, vector<1x2x2x256xf32>
    %45 = vector.shape_cast %44 : vector<1x2x2x256xf32> to vector<2x2x256xf32>
    %46 = vector.shape_cast %43 : vector<2x2x256xf32> to vector<1x2x2x256xf32>
    tpu.vector_store %arg5[%c0_24, %c0_25, %c0_26, %c0_27], %46 {strides = array<i32>} : memref<1x2x2x256xf32, #tpu.memory_space<vmem>>, vector<1x2x2x256xf32>,
    return
  }
  func.func @transform_0(%arg0: i32) -> (i32, i32, i32, i32) {
    %c0_i32 = arith.constant 0 : i32
    %c0_i32_0 = arith.constant 0 : i32
    %c0_i32_1 = arith.constant 0 : i32
    %c0_i32_2 = arith.constant 0 : i32
    return %arg0, %c0_i32, %c0_i32_0, %c0_i32_1 : i32, i32, i32, i32
  }
  func.func @transform_1(%arg0: i32) -> (i32, i32, i32, i32) {
    %c0_i32 = arith.constant 0 : i32
    %c0_i32_0 = arith.constant 0 : i32
    %c0_i32_1 = arith.constant 0 : i32
    %c0_i32_2 = arith.constant 0 : i32
    return %arg0, %c0_i32, %c0_i32_0, %c0_i32_1 : i32, i32, i32, i32
  }
  func.func @transform_2(%arg0: i32) -> (i32, i32, i32, i32) {
    %c0_i32 = arith.constant 0 : i32
    %c0_i32_0 = arith.constant 0 : i32
    %c0_i32_1 = arith.constant 0 : i32
    %c0_i32_2 = arith.constant 0 : i32
    return %arg0, %c0_i32, %c0_i32_0, %c0_i32_1 : i32, i32, i32, i32
  }
  func.func @transform_3(%arg0: i32) -> (i32, i32, i32, i32) {
    %c0_i32 = arith.constant 0 : i32
    %c0_i32_0 = arith.constant 0 : i32
    %c0_i32_1 = arith.constant 0 : i32
    %c0_i32_2 = arith.constant 0 : i32
    return %arg0, %c0_i32, %c0_i32_0, %c0_i32_1 : i32, i32, i32, i32
  }
  func.func @transform_4(%arg0: i32) -> (i32, i32, i32, i32) {
    %c0_i32 = arith.constant 0 : i32
    %c0_i32_0 = arith.constant 0 : i32
    %c0_i32_1 = arith.constant 0 : i32
    %c0_i32_2 = arith.constant 0 : i32
    return %arg0, %c0_i32, %c0_i32_0, %c0_i32_1 : i32, i32, i32, i32
  }
}

module attributes {stable_mosaic.version = 11 : i64} {
  func.func @_matmul_kernel(%arg0: i32, %arg1: memref<8x8xbf16, #tpu.memory_space<vmem>>, %arg2: memref<8x512xbf16, #tpu.memory_space<vmem>>, %arg3: memref<8x1xf32, #tpu.memory_space<vmem>>, %arg4: memref<8x512xf32, #tpu.memory_space<vmem>>) attributes {dimension_semantics = [#tpu.dimension_semantics<parallel>], iteration_bounds = array<i64: 1>, scalar_prefetch = 0 : i64, scratch_operands = 0 : i64, tpu.core_type = #tpu.core_type<tc>, window_params = [{pipeline_mode = #tpu.pipeline_mode<synchronous>, transform_indices = @transform_0, window_bounds = array<i64: 8, 8>}, {transform_indices = @transform_1, window_bounds = array<i64: 8, 512>}, {pipeline_mode = #tpu.pipeline_mode<synchronous>, transform_indices = @transform_2, window_bounds = array<i64: 8, 1>}, {transform_indices = @transform_3, window_bounds = array<i64: 8, 512>}]} {
    %c0 = arith.constant 0 : index
    %c0_0 = arith.constant 0 : index
    %0 = vector.load %arg2[%c0, %c0_0] : memref<8x512xbf16, #tpu.memory_space<vmem>>, vector<8x512xbf16>
    %c0_1 = arith.constant 0 : index
    %c0_2 = arith.constant 0 : index
    %1 = vector.load %arg1[%c0_1, %c0_2] : memref<8x8xbf16, #tpu.memory_space<vmem>>, vector<8x8xbf16>
    %cst = arith.constant dense<0.000000e+00> : vector<8x512xf32>
    %2 = tpu.matmul %1, %0, %cst {dimension_numbers = #tpu.dot_dimension_numbers<[1], [0], [0], [1], [0, 0, 1, 1], [], []>} : vector<8x8xbf16>, vector<8x512xbf16>, vector<8x512xf32> -> vector<8x512xf32>
    %c0_3 = arith.constant 0 : index
    %c0_4 = arith.constant 0 : index
    %3 = vector.load %arg3[%c0_3, %c0_4] : memref<8x1xf32, #tpu.memory_space<vmem>>, vector<8x1xf32>
    %4 = vector.broadcast %3 : vector<8x1xf32> to vector<8x512xf32>
    %5 = arith.addf %2, %4 : vector<8x512xf32>
    %c0_5 = arith.constant 0 : index
    %c0_6 = arith.constant 0 : index
    %6 = vector.load %arg4[%c0_5, %c0_6] : memref<8x512xf32, #tpu.memory_space<vmem>>, vector<8x512xf32>
    tpu.vector_store %arg4[%c0_5, %c0_6], %5 {strides = array<i32>} : memref<8x512xf32, #tpu.memory_space<vmem>>, vector<8x512xf32>,
    return
  }
  func.func @transform_0(%arg0: i32) -> (i32, i32) {
    %c0_i32 = arith.constant 0 : i32
    %c0_i32_0 = arith.constant 0 : i32
    %c0_i32_1 = arith.constant 0 : i32
    return %c0_i32, %c0_i32_0 : i32, i32
  }
  func.func @transform_1(%arg0: i32) -> (i32, i32) {
    %c0_i32 = arith.constant 0 : i32
    %c0_i32_0 = arith.constant 0 : i32
    return %c0_i32, %arg0 : i32, i32
  }
  func.func @transform_2(%arg0: i32) -> (i32, i32) {
    %c0_i32 = arith.constant 0 : i32
    %c0_i32_0 = arith.constant 0 : i32
    %c0_i32_1 = arith.constant 0 : i32
    return %c0_i32, %c0_i32_0 : i32, i32
  }
  func.func @transform_3(%arg0: i32) -> (i32, i32) {
    %c0_i32 = arith.constant 0 : i32
    %c0_i32_0 = arith.constant 0 : i32
    return %c0_i32, %arg0 : i32, i32
  }
}

module attributes {stable_mosaic.version = 11 : i64} {
  func.func @_matmul_kernel(%arg0: i32, %arg1: memref<8x72xbf16, #tpu.memory_space<vmem>>, %arg2: memref<72x512xbf16, #tpu.memory_space<vmem>>, %arg3: memref<8x1xf32, #tpu.memory_space<vmem>>, %arg4: memref<8x512xf32, #tpu.memory_space<vmem>>, %arg5: memref<8x512xf32, #tpu.memory_space<vmem>>) attributes {dimension_semantics = [#tpu.dimension_semantics<parallel>], iteration_bounds = array<i64: 1>, scalar_prefetch = 0 : i64, scratch_operands = 0 : i64, tpu.core_type = #tpu.core_type<tc>, window_params = [{pipeline_mode = #tpu.pipeline_mode<synchronous>, transform_indices = @transform_0, window_bounds = array<i64: 8, 72>}, {transform_indices = @transform_1, window_bounds = array<i64: 72, 512>}, {pipeline_mode = #tpu.pipeline_mode<synchronous>, transform_indices = @transform_2, window_bounds = array<i64: 8, 1>}, {transform_indices = @transform_3, window_bounds = array<i64: 8, 512>}, {transform_indices = @transform_4, window_bounds = array<i64: 8, 512>}]} {
    %c0 = arith.constant 0 : index
    %c0_0 = arith.constant 0 : index
    %0 = vector.load %arg2[%c0, %c0_0] : memref<72x512xbf16, #tpu.memory_space<vmem>>, vector<72x512xbf16>
    %c0_1 = arith.constant 0 : index
    %c0_2 = arith.constant 0 : index
    %1 = vector.load %arg1[%c0_1, %c0_2] : memref<8x72xbf16, #tpu.memory_space<vmem>>, vector<8x72xbf16>
    %cst = arith.constant dense<0.000000e+00> : vector<8x512xf32>
    %2 = tpu.matmul %1, %0, %cst {dimension_numbers = #tpu.dot_dimension_numbers<[1], [0], [0], [1], [0, 0, 1, 1], [], []>} : vector<8x72xbf16>, vector<72x512xbf16>, vector<8x512xf32> -> vector<8x512xf32>
    %c0_3 = arith.constant 0 : index
    %c0_4 = arith.constant 0 : index
    %3 = vector.load %arg3[%c0_3, %c0_4] : memref<8x1xf32, #tpu.memory_space<vmem>>, vector<8x1xf32>
    %4 = vector.broadcast %3 : vector<8x1xf32> to vector<8x512xf32>
    %5 = arith.addf %2, %4 : vector<8x512xf32>
    %c0_5 = arith.constant 0 : index
    %c0_6 = arith.constant 0 : index
    %6 = vector.load %arg4[%c0_5, %c0_6] : memref<8x512xf32, #tpu.memory_space<vmem>>, vector<8x512xf32>
    %7 = arith.addf %5, %6 : vector<8x512xf32>
    %c0_7 = arith.constant 0 : index
    %c0_8 = arith.constant 0 : index
    %8 = vector.load %arg5[%c0_7, %c0_8] : memref<8x512xf32, #tpu.memory_space<vmem>>, vector<8x512xf32>
    tpu.vector_store %arg5[%c0_7, %c0_8], %7 {strides = array<i32>} : memref<8x512xf32, #tpu.memory_space<vmem>>, vector<8x512xf32>,
    return
  }
  func.func @transform_0(%arg0: i32) -> (i32, i32) {
    %c0_i32 = arith.constant 0 : i32
    %c0_i32_0 = arith.constant 0 : i32
    %c0_i32_1 = arith.constant 0 : i32
    return %c0_i32, %c0_i32_0 : i32, i32
  }
  func.func @transform_1(%arg0: i32) -> (i32, i32) {
    %c0_i32 = arith.constant 0 : i32
    %c0_i32_0 = arith.constant 0 : i32
    return %c0_i32, %arg0 : i32, i32
  }
  func.func @transform_2(%arg0: i32) -> (i32, i32) {
    %c0_i32 = arith.constant 0 : i32
    %c0_i32_0 = arith.constant 0 : i32
    %c0_i32_1 = arith.constant 0 : i32
    return %c0_i32, %c0_i32_0 : i32, i32
  }
  func.func @transform_3(%arg0: i32) -> (i32, i32) {
    %c0_i32 = arith.constant 0 : i32
    %c0_i32_0 = arith.constant 0 : i32
    return %c0_i32, %arg0 : i32, i32
  }
  func.func @transform_4(%arg0: i32) -> (i32, i32) {
    %c0_i32 = arith.constant 0 : i32
    %c0_i32_0 = arith.constant 0 : i32
    return %c0_i32, %arg0 : i32, i32
  }
}

module attributes {stable_mosaic.version = 11 : i64} {
  func.func @_groupnorm_kernel(%arg0: i32, %arg1: memref<1x2x2x256xf32, #tpu.memory_space<vmem>>, %arg2: memref<1x2x1x1xf32, #tpu.memory_space<vmem>>, %arg3: memref<1x2x1x1xf32, #tpu.memory_space<vmem>>, %arg4: memref<1x2x2x256xf32, #tpu.memory_space<vmem>>) attributes {dimension_semantics = [#tpu.dimension_semantics<parallel>], iteration_bounds = array<i64: 4>, scalar_prefetch = 0 : i64, scratch_operands = 0 : i64, tpu.core_type = #tpu.core_type<tc>, window_params = [{transform_indices = @transform_0, window_bounds = array<i64: 1, 2, 2, 256>}, {transform_indices = @transform_1, window_bounds = array<i64: 1, 2, 1, 1>}, {transform_indices = @transform_2, window_bounds = array<i64: 1, 2, 1, 1>}, {transform_indices = @transform_3, window_bounds = array<i64: 1, 2, 2, 256>}]} {
    %c0 = arith.constant 0 : index
    %c0_0 = arith.constant 0 : index
    %c0_1 = arith.constant 0 : index
    %c0_2 = arith.constant 0 : index
    %0 = vector.load %arg1[%c0, %c0_0, %c0_1, %c0_2] : memref<1x2x2x256xf32, #tpu.memory_space<vmem>>, vector<1x2x2x256xf32>
    %1 = vector.shape_cast %0 : vector<1x2x2x256xf32> to vector<2x2x256xf32>
    %cst = arith.constant dense<0.000000e+00> : vector<2x2xf32>
    %2 = vector.multi_reduction <add>, %1, %cst [2] : vector<2x2x256xf32> to vector<2x2xf32>
    %3 = vector.shape_cast %2 : vector<2x2xf32> to vector<2x2x1xf32>
    %cst_3 = arith.constant 2.560000e+02 : f32
    %4 = vector.broadcast %cst_3 : f32 to vector<2x2x1xf32>
    %5 = arith.divf %3, %4 : vector<2x2x1xf32>
    %cst_4 = arith.constant dense<0.000000e+00> : vector<2x1xf32>
    %6 = vector.multi_reduction <add>, %5, %cst_4 [0] : vector<2x2x1xf32> to vector<2x1xf32>
    %7 = vector.shape_cast %6 : vector<2x1xf32> to vector<1x2x1xf32>
    %cst_5 = arith.constant 2.000000e+00 : f32
    %8 = vector.broadcast %cst_5 : f32 to vector<1x2x1xf32>
    %9 = arith.divf %7, %8 : vector<1x2x1xf32>
    %10 = vector.broadcast %9 : vector<1x2x1xf32> to vector<2x2x256xf32>
    %11 = arith.subf %1, %10 : vector<2x2x256xf32>
    %12 = arith.mulf %11, %11 : vector<2x2x256xf32>
    %cst_6 = arith.constant dense<0.000000e+00> : vector<2x2xf32>
    %13 = vector.multi_reduction <add>, %12, %cst_6 [2] : vector<2x2x256xf32> to vector<2x2xf32>
    %14 = vector.shape_cast %13 : vector<2x2xf32> to vector<2x2x1xf32>
    %cst_7 = arith.constant 2.560000e+02 : f32
    %15 = vector.broadcast %cst_7 : f32 to vector<2x2x1xf32>
    %16 = arith.divf %14, %15 : vector<2x2x1xf32>
    %cst_8 = arith.constant dense<0.000000e+00> : vector<2x1xf32>
    %17 = vector.multi_reduction <add>, %16, %cst_8 [0] : vector<2x2x1xf32> to vector<2x1xf32>
    %18 = vector.shape_cast %17 : vector<2x1xf32> to vector<1x2x1xf32>
    %cst_9 = arith.constant 2.000000e+00 : f32
    %19 = vector.broadcast %cst_9 : f32 to vector<1x2x1xf32>
    %20 = arith.divf %18, %19 : vector<1x2x1xf32>
    %cst_10 = arith.constant 9.99999974E-6 : f32
    %21 = vector.broadcast %cst_10 : f32 to vector<1x2x1xf32>
    %22 = arith.addf %20, %21 : vector<1x2x1xf32>
    %23 = math.rsqrt %22 : vector<1x2x1xf32>
    %24 = vector.broadcast %23 : vector<1x2x1xf32> to vector<2x2x256xf32>
    %25 = arith.mulf %11, %24 : vector<2x2x256xf32>
    %c0_11 = arith.constant 0 : index
    %c0_12 = arith.constant 0 : index
    %c0_13 = arith.constant 0 : index
    %c0_14 = arith.constant 0 : index
    %26 = vector.load %arg2[%c0_11, %c0_12, %c0_13, %c0_14] : memref<1x2x1x1xf32, #tpu.memory_space<vmem>>, vector<1x2x1x1xf32>
    %27 = vector.shape_cast %26 : vector<1x2x1x1xf32> to vector<2x1x1xf32>
    %28 = vector.broadcast %27 : vector<2x1x1xf32> to vector<2x2x256xf32>
    %29 = arith.mulf %25, %28 : vector<2x2x256xf32>
    %c0_15 = arith.constant 0 : index
    %c0_16 = arith.constant 0 : index
    %c0_17 = arith.constant 0 : index
    %c0_18 = arith.constant 0 : index
    %30 = vector.load %arg3[%c0_15, %c0_16, %c0_17, %c0_18] : memref<1x2x1x1xf32, #tpu.memory_space<vmem>>, vector<1x2x1x1xf32>
    %31 = vector.shape_cast %30 : vector<1x2x1x1xf32> to vector<2x1x1xf32>
    %32 = vector.broadcast %31 : vector<2x1x1xf32> to vector<2x2x256xf32>
    %33 = arith.addf %29, %32 : vector<2x2x256xf32>
    %c0_19 = arith.constant 0 : index
    %c0_20 = arith.constant 0 : index
    %c0_21 = arith.constant 0 : index
    %c0_22 = arith.constant 0 : index
    %34 = vector.load %arg4[%c0_19, %c0_20, %c0_21, %c0_22] : memref<1x2x2x256xf32, #tpu.memory_space<vmem>>, vector<1x2x2x256xf32>
    %35 = vector.shape_cast %34 : vector<1x2x2x256xf32> to vector<2x2x256xf32>
    %36 = vector.shape_cast %33 : vector<2x2x256xf32> to vector<1x2x2x256xf32>
    tpu.vector_store %arg4[%c0_19, %c0_20, %c0_21, %c0_22], %36 {strides = array<i32>} : memref<1x2x2x256xf32, #tpu.memory_space<vmem>>, vector<1x2x2x256xf32>,
    return
  }
  func.func @transform_0(%arg0: i32) -> (i32, i32, i32, i32) {
    %c0_i32 = arith.constant 0 : i32
    %c0_i32_0 = arith.constant 0 : i32
    %c0_i32_1 = arith.constant 0 : i32
    %c0_i32_2 = arith.constant 0 : i32
    return %arg0, %c0_i32, %c0_i32_0, %c0_i32_1 : i32, i32, i32, i32
  }
  func.func @transform_1(%arg0: i32) -> (i32, i32, i32, i32) {
    %c0_i32 = arith.constant 0 : i32
    %c0_i32_0 = arith.constant 0 : i32
    %c0_i32_1 = arith.constant 0 : i32
    %c0_i32_2 = arith.constant 0 : i32
    return %arg0, %c0_i32, %c0_i32_0, %c0_i32_1 : i32, i32, i32, i32
  }
  func.func @transform_2(%arg0: i32) -> (i32, i32, i32, i32) {
    %c0_i32 = arith.constant 0 : i32
    %c0_i32_0 = arith.constant 0 : i32
    %c0_i32_1 = arith.constant 0 : i32
    %c0_i32_2 = arith.constant 0 : i32
    return %arg0, %c0_i32, %c0_i32_0, %c0_i32_1 : i32, i32, i32, i32
  }
  func.func @transform_3(%arg0: i32) -> (i32, i32, i32, i32) {
    %c0_i32 = arith.constant 0 : i32
    %c0_i32_0 = arith.constant 0 : i32
    %c0_i32_1 = arith.constant 0 : i32
    %c0_i32_2 = arith.constant 0 : i32
    return %arg0, %c0_i32, %c0_i32_0, %c0_i32_1 : i32, i32, i32, i32
  }
}

module attributes {stable_mosaic.version = 11 : i64} {
  func.func @_matmul_kernel(%arg0: i32, %arg1: memref<24x8xbf16, #tpu.memory_space<vmem>>, %arg2: memref<8x512xbf16, #tpu.memory_space<vmem>>, %arg3: memref<24x1xf32, #tpu.memory_space<vmem>>, %arg4: memref<24x512xf32, #tpu.memory_space<vmem>>) attributes {dimension_semantics = [#tpu.dimension_semantics<parallel>], iteration_bounds = array<i64: 1>, scalar_prefetch = 0 : i64, scratch_operands = 0 : i64, tpu.core_type = #tpu.core_type<tc>, window_params = [{pipeline_mode = #tpu.pipeline_mode<synchronous>, transform_indices = @transform_0, window_bounds = array<i64: 24, 8>}, {transform_indices = @transform_1, window_bounds = array<i64: 8, 512>}, {pipeline_mode = #tpu.pipeline_mode<synchronous>, transform_indices = @transform_2, window_bounds = array<i64: 24, 1>}, {transform_indices = @transform_3, window_bounds = array<i64: 24, 512>}]} {
    %c0 = arith.constant 0 : index
    %c0_0 = arith.constant 0 : index
    %0 = vector.load %arg2[%c0, %c0_0] : memref<8x512xbf16, #tpu.memory_space<vmem>>, vector<8x512xbf16>
    %c0_1 = arith.constant 0 : index
    %c0_2 = arith.constant 0 : index
    %1 = vector.load %arg1[%c0_1, %c0_2] : memref<24x8xbf16, #tpu.memory_space<vmem>>, vector<24x8xbf16>
    %cst = arith.constant dense<0.000000e+00> : vector<24x512xf32>
    %2 = tpu.matmul %1, %0, %cst {dimension_numbers = #tpu.dot_dimension_numbers<[1], [0], [0], [1], [0, 0, 1, 1], [], []>} : vector<24x8xbf16>, vector<8x512xbf16>, vector<24x512xf32> -> vector<24x512xf32>
    %c0_3 = arith.constant 0 : index
    %c0_4 = arith.constant 0 : index
    %3 = vector.load %arg3[%c0_3, %c0_4] : memref<24x1xf32, #tpu.memory_space<vmem>>, vector<24x1xf32>
    %4 = vector.broadcast %3 : vector<24x1xf32> to vector<24x512xf32>
    %5 = arith.addf %2, %4 : vector<24x512xf32>
    %c0_5 = arith.constant 0 : index
    %c0_6 = arith.constant 0 : index
    %6 = vector.load %arg4[%c0_5, %c0_6] : memref<24x512xf32, #tpu.memory_space<vmem>>, vector<24x512xf32>
    tpu.vector_store %arg4[%c0_5, %c0_6], %5 {strides = array<i32>} : memref<24x512xf32, #tpu.memory_space<vmem>>, vector<24x512xf32>,
    return
  }
  func.func @transform_0(%arg0: i32) -> (i32, i32) {
    %c0_i32 = arith.constant 0 : i32
    %c0_i32_0 = arith.constant 0 : i32
    %c0_i32_1 = arith.constant 0 : i32
    return %c0_i32, %c0_i32_0 : i32, i32
  }
  func.func @transform_1(%arg0: i32) -> (i32, i32) {
    %c0_i32 = arith.constant 0 : i32
    %c0_i32_0 = arith.constant 0 : i32
    return %c0_i32, %arg0 : i32, i32
  }
  func.func @transform_2(%arg0: i32) -> (i32, i32) {
    %c0_i32 = arith.constant 0 : i32
    %c0_i32_0 = arith.constant 0 : i32
    %c0_i32_1 = arith.constant 0 : i32
    return %c0_i32, %c0_i32_0 : i32, i32
  }
  func.func @transform_3(%arg0: i32) -> (i32, i32) {
    %c0_i32 = arith.constant 0 : i32
    %c0_i32_0 = arith.constant 0 : i32
    return %c0_i32, %arg0 : i32, i32
  }
}

module attributes {stable_mosaic.version = 11 : i64} {
  func.func @_flash_kernel(%arg0: i32, %arg1: i32, %arg2: i32, %arg3: memref<1x4x128xbf16, #tpu.memory_space<vmem>>, %arg4: memref<1x4x128xbf16, #tpu.memory_space<vmem>>, %arg5: memref<1x4x128xbf16, #tpu.memory_space<vmem>>, %arg6: memref<1x4x128xf32, #tpu.memory_space<vmem>>, %arg7: memref<1x128xf32, #tpu.memory_space<vmem>>, %arg8: memref<1x128xf32, #tpu.memory_space<vmem>>, %arg9: memref<4x128xf32, #tpu.memory_space<vmem>>) attributes {dimension_semantics = [#tpu.dimension_semantics<parallel>, #tpu.dimension_semantics<parallel>, #tpu.dimension_semantics<arbitrary>], iteration_bounds = array<i64: 4, 2, 2>, scalar_prefetch = 0 : i64, scratch_operands = 3 : i64, tpu.core_type = #tpu.core_type<tc>, window_params = [{transform_indices = @transform_0, window_bounds = array<i64: 1, 4, 128>}, {transform_indices = @transform_1, window_bounds = array<i64: 1, 4, 128>}, {transform_indices = @transform_2, window_bounds = array<i64: 1, 4, 128>}, {transform_indices = @transform_3, window_bounds = array<i64: 1, 4, 128>}]} {
    %c0_i32 = arith.constant 0 : i32
    %0 = arith.cmpi eq, %arg2, %c0_i32 : i32
    %1 = arith.extui %0 : i1 to i32
    %c0_i32_0 = arith.constant 0 : i32
    %2 = arith.cmpi ne, %1, %c0_i32_0 : i32
    scf.if %2 {
      %cst_26 = arith.constant 0xFF800000 : f32
      %38 = vector.broadcast %cst_26 : f32 to vector<1x128xf32>
      %c0_27 = arith.constant 0 : index
      %c0_28 = arith.constant 0 : index
      %39 = vector.load %arg7[%c0_27, %c0_28] : memref<1x128xf32, #tpu.memory_space<vmem>>, vector<1x128xf32>
      tpu.vector_store %arg7[%c0_27, %c0_28], %38 {strides = array<i32>} : memref<1x128xf32, #tpu.memory_space<vmem>>, vector<1x128xf32>,
      %cst_29 = arith.constant 0.000000e+00 : f32
      %40 = vector.broadcast %cst_29 : f32 to vector<1x128xf32>
      %c0_30 = arith.constant 0 : index
      %c0_31 = arith.constant 0 : index
      %41 = vector.load %arg8[%c0_30, %c0_31] : memref<1x128xf32, #tpu.memory_space<vmem>>, vector<1x128xf32>
      tpu.vector_store %arg8[%c0_30, %c0_31], %40 {strides = array<i32>} : memref<1x128xf32, #tpu.memory_space<vmem>>, vector<1x128xf32>,
      %cst_32 = arith.constant 0.000000e+00 : f32
      %42 = vector.broadcast %cst_32 : f32 to vector<4x128xf32>
      %c0_33 = arith.constant 0 : index
      %c0_34 = arith.constant 0 : index
      %43 = vector.load %arg9[%c0_33, %c0_34] : memref<4x128xf32, #tpu.memory_space<vmem>>, vector<4x128xf32>
      tpu.vector_store %arg9[%c0_33, %c0_34], %42 {strides = array<i32>} : memref<4x128xf32, #tpu.memory_space<vmem>>, vector<4x128xf32>,
    } else {
    }
    %c0 = arith.constant 0 : index
    %c0_1 = arith.constant 0 : index
    %c0_2 = arith.constant 0 : index
    %3 = vector.load %arg3[%c0, %c0_1, %c0_2] : memref<1x4x128xbf16, #tpu.memory_space<vmem>>, vector<1x4x128xbf16>
    %4 = vector.shape_cast %3 : vector<1x4x128xbf16> to vector<4x128xbf16>
    %cst = arith.constant 5.000000e-01 : bf16
    %5 = vector.broadcast %cst : bf16 to vector<4x128xbf16>
    %6 = arith.mulf %4, %5 : vector<4x128xbf16>
    %c0_3 = arith.constant 0 : index
    %c0_4 = arith.constant 0 : index
    %c0_5 = arith.constant 0 : index
    %7 = vector.load %arg4[%c0_3, %c0_4, %c0_5] : memref<1x4x128xbf16, #tpu.memory_space<vmem>>, vector<1x4x128xbf16>
    %8 = vector.shape_cast %7 : vector<1x4x128xbf16> to vector<4x128xbf16>
    %c0_6 = arith.constant 0 : index
    %c0_7 = arith.constant 0 : index
    %c0_8 = arith.constant 0 : index
    %9 = vector.load %arg5[%c0_6, %c0_7, %c0_8] : memref<1x4x128xbf16, #tpu.memory_space<vmem>>, vector<1x4x128xbf16>
    %10 = vector.shape_cast %9 : vector<1x4x128xbf16> to vector<4x128xbf16>
    %cst_9 = arith.constant dense<0.000000e+00> : vector<128x128xf32>
    %11 = tpu.matmul %8, %6, %cst_9 {dimension_numbers = #tpu.dot_dimension_numbers<[0], [0], [1], [1], [0, 1, 1, 1], [], []>} : vector<4x128xbf16>, vector<4x128xbf16>, vector<128x128xf32> -> vector<128x128xf32>
    %c0_10 = arith.constant 0 : index
    %c0_11 = arith.constant 0 : index
    %12 = vector.load %arg7[%c0_10, %c0_11] : memref<1x128xf32, #tpu.memory_space<vmem>>, vector<1x128xf32>
    %cst_12 = arith.constant dense<0xFF800000> : vector<128xf32>
    %13 = vector.multi_reduction <maximumf>, %11, %cst_12 [0] : vector<128x128xf32> to vector<128xf32>
    %14 = vector.shape_cast %13 : vector<128xf32> to vector<1x128xf32>
    %15 = arith.maximumf %12, %14 : vector<1x128xf32>
    %16 = arith.subf %12, %15 : vector<1x128xf32>
    %17 = math.exp %16 : vector<1x128xf32>
    %18 = vector.broadcast %15 : vector<1x128xf32> to vector<128x128xf32>
    %19 = arith.subf %11, %18 : vector<128x128xf32>
    %20 = math.exp %19 : vector<128x128xf32>
    %c0_13 = arith.constant 0 : index
    %c0_14 = arith.constant 0 : index
    %21 = vector.load %arg8[%c0_13, %c0_14] : memref<1x128xf32, #tpu.memory_space<vmem>>, vector<1x128xf32>
    %22 = arith.mulf %17, %21 : vector<1x128xf32>
    %cst_15 = arith.constant dense<0.000000e+00> : vector<128xf32>
    %23 = vector.multi_reduction <add>, %20, %cst_15 [0] : vector<128x128xf32> to vector<128xf32>
    %24 = vector.shape_cast %23 : vector<128xf32> to vector<1x128xf32>
    %25 = arith.addf %22, %24 : vector<1x128xf32>
    %c0_16 = arith.constant 0 : index
    %c0_17 = arith.constant 0 : index
    %26 = vector.load %arg8[%c0_16, %c0_17] : memref<1x128xf32, #tpu.memory_space<vmem>>, vector<1x128xf32>
    tpu.vector_store %arg8[%c0_16, %c0_17], %25 {strides = array<i32>} : memref<1x128xf32, #tpu.memory_space<vmem>>, vector<1x128xf32>,
    %c0_18 = arith.constant 0 : index
    %c0_19 = arith.constant 0 : index
    %27 = vector.load %arg9[%c0_18, %c0_19] : memref<4x128xf32, #tpu.memory_space<vmem>>, vector<4x128xf32>
    %28 = vector.broadcast %17 : vector<1x128xf32> to vector<4x128xf32>
    %29 = arith.mulf %28, %27 : vector<4x128xf32>
    %30 = arith.truncf %20 : vector<128x128xf32> to vector<128x128xbf16>
    %cst_20 = arith.constant dense<0.000000e+00> : vector<4x128xf32>
    %31 = tpu.matmul %10, %30, %cst_20 {dimension_numbers = #tpu.dot_dimension_numbers<[1], [0], [0], [1], [0, 0, 1, 1], [], []>} : vector<4x128xbf16>, vector<128x128xbf16>, vector<4x128xf32> -> vector<4x128xf32>
    %32 = arith.addf %29, %31 : vector<4x128xf32>
    %c0_21 = arith.constant 0 : index
    %c0_22 = arith.constant 0 : index
    %33 = vector.load %arg9[%c0_21, %c0_22] : memref<4x128xf32, #tpu.memory_space<vmem>>, vector<4x128xf32>
    tpu.vector_store %arg9[%c0_21, %c0_22], %32 {strides = array<i32>} : memref<4x128xf32, #tpu.memory_space<vmem>>, vector<4x128xf32>,
    %c0_23 = arith.constant 0 : index
    %c0_24 = arith.constant 0 : index
    %34 = vector.load %arg7[%c0_23, %c0_24] : memref<1x128xf32, #tpu.memory_space<vmem>>, vector<1x128xf32>
    tpu.vector_store %arg7[%c0_23, %c0_24], %15 {strides = array<i32>} : memref<1x128xf32, #tpu.memory_space<vmem>>, vector<1x128xf32>,
    %c1_i32 = arith.constant 1 : i32
    %35 = arith.cmpi eq, %arg2, %c1_i32 : i32
    %36 = arith.extui %35 : i1 to i32
    %c0_i32_25 = arith.constant 0 : i32
    %37 = arith.cmpi ne, %36, %c0_i32_25 : i32
    scf.if %37 {
      %c0_26 = arith.constant 0 : index
      %c0_27 = arith.constant 0 : index
      %38 = vector.load %arg9[%c0_26, %c0_27] : memref<4x128xf32, #tpu.memory_space<vmem>>, vector<4x128xf32>
      %c0_28 = arith.constant 0 : index
      %c0_29 = arith.constant 0 : index
      %39 = vector.load %arg8[%c0_28, %c0_29] : memref<1x128xf32, #tpu.memory_space<vmem>>, vector<1x128xf32>
      %40 = tpu.reciprocal %39 {approx = true} : vector<1x128xf32> -> vector<1x128xf32>
      %41 = vector.broadcast %40 : vector<1x128xf32> to vector<4x128xf32>
      %42 = arith.mulf %38, %41 : vector<4x128xf32>
      %c0_30 = arith.constant 0 : index
      %c0_31 = arith.constant 0 : index
      %c0_32 = arith.constant 0 : index
      %43 = vector.load %arg6[%c0_30, %c0_31, %c0_32] : memref<1x4x128xf32, #tpu.memory_space<vmem>>, vector<1x4x128xf32>
      %44 = vector.shape_cast %43 : vector<1x4x128xf32> to vector<4x128xf32>
      %45 = vector.shape_cast %42 : vector<4x128xf32> to vector<1x4x128xf32>
      tpu.vector_store %arg6[%c0_30, %c0_31, %c0_32], %45 {strides = array<i32>} : memref<1x4x128xf32, #tpu.memory_space<vmem>>, vector<1x4x128xf32>,
    } else {
    }
    return
  }
  func.func @transform_0(%arg0: i32, %arg1: i32, %arg2: i32) -> (i32, i32, i32) {
    %c0_i32 = arith.constant 0 : i32
    %c0_i32_0 = arith.constant 0 : i32
    return %arg0, %c0_i32, %arg1 : i32, i32, i32
  }
  func.func @transform_1(%arg0: i32, %arg1: i32, %arg2: i32) -> (i32, i32, i32) {
    %c0_i32 = arith.constant 0 : i32
    %c0_i32_0 = arith.constant 0 : i32
    return %arg0, %c0_i32, %arg2 : i32, i32, i32
  }
  func.func @transform_2(%arg0: i32, %arg1: i32, %arg2: i32) -> (i32, i32, i32) {
    %c0_i32 = arith.constant 0 : i32
    %c0_i32_0 = arith.constant 0 : i32
    return %arg0, %c0_i32, %arg2 : i32, i32, i32
  }
  func.func @transform_3(%arg0: i32, %arg1: i32, %arg2: i32) -> (i32, i32, i32) {
    %c0_i32 = arith.constant 0 : i32
    %c0_i32_0 = arith.constant 0 : i32
    return %arg0, %c0_i32, %arg1 : i32, i32, i32
  }
}

module attributes {stable_mosaic.version = 11 : i64} {
  func.func @_matmul_kernel(%arg0: i32, %arg1: memref<8x8xbf16, #tpu.memory_space<vmem>>, %arg2: memref<8x512xbf16, #tpu.memory_space<vmem>>, %arg3: memref<8x1xf32, #tpu.memory_space<vmem>>, %arg4: memref<8x512xf32, #tpu.memory_space<vmem>>, %arg5: memref<8x512xf32, #tpu.memory_space<vmem>>) attributes {dimension_semantics = [#tpu.dimension_semantics<parallel>], iteration_bounds = array<i64: 1>, scalar_prefetch = 0 : i64, scratch_operands = 0 : i64, tpu.core_type = #tpu.core_type<tc>, window_params = [{pipeline_mode = #tpu.pipeline_mode<synchronous>, transform_indices = @transform_0, window_bounds = array<i64: 8, 8>}, {transform_indices = @transform_1, window_bounds = array<i64: 8, 512>}, {pipeline_mode = #tpu.pipeline_mode<synchronous>, transform_indices = @transform_2, window_bounds = array<i64: 8, 1>}, {transform_indices = @transform_3, window_bounds = array<i64: 8, 512>}, {transform_indices = @transform_4, window_bounds = array<i64: 8, 512>}]} {
    %c0 = arith.constant 0 : index
    %c0_0 = arith.constant 0 : index
    %0 = vector.load %arg2[%c0, %c0_0] : memref<8x512xbf16, #tpu.memory_space<vmem>>, vector<8x512xbf16>
    %c0_1 = arith.constant 0 : index
    %c0_2 = arith.constant 0 : index
    %1 = vector.load %arg1[%c0_1, %c0_2] : memref<8x8xbf16, #tpu.memory_space<vmem>>, vector<8x8xbf16>
    %cst = arith.constant dense<0.000000e+00> : vector<8x512xf32>
    %2 = tpu.matmul %1, %0, %cst {dimension_numbers = #tpu.dot_dimension_numbers<[1], [0], [0], [1], [0, 0, 1, 1], [], []>} : vector<8x8xbf16>, vector<8x512xbf16>, vector<8x512xf32> -> vector<8x512xf32>
    %c0_3 = arith.constant 0 : index
    %c0_4 = arith.constant 0 : index
    %3 = vector.load %arg3[%c0_3, %c0_4] : memref<8x1xf32, #tpu.memory_space<vmem>>, vector<8x1xf32>
    %4 = vector.broadcast %3 : vector<8x1xf32> to vector<8x512xf32>
    %5 = arith.addf %2, %4 : vector<8x512xf32>
    %c0_5 = arith.constant 0 : index
    %c0_6 = arith.constant 0 : index
    %6 = vector.load %arg4[%c0_5, %c0_6] : memref<8x512xf32, #tpu.memory_space<vmem>>, vector<8x512xf32>
    %7 = arith.addf %5, %6 : vector<8x512xf32>
    %c0_7 = arith.constant 0 : index
    %c0_8 = arith.constant 0 : index
    %8 = vector.load %arg5[%c0_7, %c0_8] : memref<8x512xf32, #tpu.memory_space<vmem>>, vector<8x512xf32>
    tpu.vector_store %arg5[%c0_7, %c0_8], %7 {strides = array<i32>} : memref<8x512xf32, #tpu.memory_space<vmem>>, vector<8x512xf32>,
    return
  }
  func.func @transform_0(%arg0: i32) -> (i32, i32) {
    %c0_i32 = arith.constant 0 : i32
    %c0_i32_0 = arith.constant 0 : i32
    %c0_i32_1 = arith.constant 0 : i32
    return %c0_i32, %c0_i32_0 : i32, i32
  }
  func.func @transform_1(%arg0: i32) -> (i32, i32) {
    %c0_i32 = arith.constant 0 : i32
    %c0_i32_0 = arith.constant 0 : i32
    return %c0_i32, %arg0 : i32, i32
  }
  func.func @transform_2(%arg0: i32) -> (i32, i32) {
    %c0_i32 = arith.constant 0 : i32
    %c0_i32_0 = arith.constant 0 : i32
    %c0_i32_1 = arith.constant 0 : i32
    return %c0_i32, %c0_i32_0 : i32, i32
  }
  func.func @transform_3(%arg0: i32) -> (i32, i32) {
    %c0_i32 = arith.constant 0 : i32
    %c0_i32_0 = arith.constant 0 : i32
    return %c0_i32, %arg0 : i32, i32
  }
  func.func @transform_4(%arg0: i32) -> (i32, i32) {
    %c0_i32 = arith.constant 0 : i32
    %c0_i32_0 = arith.constant 0 : i32
    return %c0_i32, %arg0 : i32, i32
  }
}

</mosaic_0001>

<bundles_post_ra>
// kernel: mid_block_forward.16
= control target key start
LH: loop header
LB: loop body
LE: loop exit
PB: predicated region body
PF: predicated region fallthrough
CT: control target
= control target key end

     0   :  { %s526_s12 = smov 0   ;;  %s573_s0 = inlined_call_operand.vmem [shape: f32[4,2,2,256], index: 0, kind: input, shape index: {}]   ;;  %s574_s1 = inlined_call_operand.vmem [shape: f32[4,2,1,1], index: 1, kind: input, shape index: {}]   ;;  %s575_s2 = inlined_call_operand.vmem [shape: f32[4,2,1,1], index: 2, kind: input, shape index: {}]   ;;  %s576_s3 = inlined_call_operand.vmem [shape: f32[4,2,2,256], index: 3, kind: output, shape index: {}]  }
   0x1 LB: > { %s451_s13 = sadd.s32 4294967295, %s501_s12   ;;  %p455_p0 = scmp.ge.s32.totalorder %s501_s12, 1  ;;  %s501_s12 = sphi %s526_s12, %s13_s12  }
   0x2   : > { %p155_p1 = scmp.lt.s32.totalorder %s501_s12, 5 }
   0x4   : > { %p156_p2 = pnand %p455_p0, %p155_p1 }
   0x5   : > { %p187_p3 = scmp.lt.s32.totalorder (!%p156_p2), %s451_s13, 3  ;;  %v212_v0 = vlaneseq (!%p156_p2)  ;;  %v503_v1 = vmov (!%p156_p2), 1983009808   ;;  %v504_v3 = vmov (!%p156_p2), 0   ;;  %vm229_vm0 = vcmask (!%p156_p2), 1041408  }
   0x6   : > { %159 = sbr.rel (%p156_p2) target bundleno = 394 (0x18a), region = 32  ;;  %v210_v2 = vunpack.c.l.s4 (!%p156_p2), %v503_v1  ;;  %484 = vset.pattern.permute.xlu1 (!%p156_p2), %v504_v3  ;;  %483 = vset.pattern.permute.xlu0 (!%p156_p2), %v504_v3  ;;  %v505_v23 = vmov (!%p156_p2), 269488144  }
   0x7   : > { %v213_v4 = vshrl.u32 (!%p156_p2), %v212_v0, 7  ;;  %v250_v24 = vunpack.c.l.s4 (!%p156_p2), %v505_v23 }
   0x8   : > { %v211_v5 = vunpack.c.0.s8 (!%p156_p2), %v210_v2 }
   0x9   : > { %v251_v26 = vunpack.c.0.s8 (!%p156_p2), %v250_v24 }
   0xa   : > { %v214_v6 = vsub.s32 (!%p156_p2), %v211_v5, %v213_v4 }
   0xb   : > { %v254_v31 = vsub.s32 (!%p156_p2), %v251_v26, %v213_v4 }
   0xd   : > { %s578_s13 = smov (!%p187_p3, %s451_s13), 3 }
   0xe   : > { %s470_s14 = sshll.u32 %s578_s13, 3  ;;  %s458_s15 = sshll.u32 %s578_s13, 1 }
   0xf   : > { %s191_s18 = scalar_lea.vmem %s573_s0, %s470_s14  ;;  %s195_s21 = scalar_lea.vmem %s574_s1, %s458_s15 }
  0x10   : > { %v205_v7 = vld [vmem:[%s191_s18] sm:$0xf]  ;;  %v206_v8 = vld [vmem:[%s191_s18 + $0x4] sm:$0xf]  ;;  %s549_s24 = scalar_lea.vmem %s575_s2, %s458_s15  ;;  %s204_s27 = scalar_lea.vmem %s576_s3, %s470_s14 }
  0x11   : > { %v463_v9 = vld [vmem:[%s195_s21 + $0x1] ss:$0 sm:$0xff]  ;;  %v215_v10 = vrot.slane %v205_v7, %v214_v6  ;;  %v223_v11 = vrot.slane %v206_v8, %v214_v6  ;;  %v464_v12 = vld [vmem:[%s549_s24] ss:$0 sm:$0xff] }
  0x12   : > { %329 = vperm.xlu1 %484, %v463_v9   ;;  %v462_v21 = vld [vmem:[%s195_s21] ss:$0 sm:$0xff]  ;;  %v465_v49 = vld [vmem:[%s549_s24 + $0x1] ss:$0 sm:$0xff] }
  0x13   : > { %v216_v13 = vcombine.high %v215_v10, %v215_v10  ;;  %v230_v14 = vsel %vm229_vm0, %v215_v10, 0.0  ;;  %v224_v15 = vcombine.high %v223_v11, %v223_v11  ;;  %v235_v17 = vsel %vm229_vm0, %v223_v11, 0.0 }
  0x15   : > { %v231_v16 = vsel %vm229_vm0, %v216_v13, 0.0  ;;  %v236_v18 = vsel %vm229_vm0, %v224_v15, 0.0 }
  0x16   : > { %347 = vperm.xlu1 %484, %v464_v12   ;;  %v232_v19 = vadd.f32 %v231_v16, %v230_v14  ;;  %v237_v20 = vadd.f32 %v236_v18, %v235_v17 }
  0x18   : > { %233 = vadd.xlane.f32.xlu0 %v232_v19 }
  0x1c   : > { %238 = vadd.xlane.f32.xlu0 %v237_v20 }
  0x32   : > { %325 = vperm.xlu0 %483, %v462_v21  }
  0x91   : > { %v330_v50 = vpop.permute.xlu1 %329 }
  0x95   : > { %v348_v51 = vpop.permute.xlu1 %347 }
  0xa5   : > { %v234_v22 = vpop.xlane.xlu0 %233 }
  0xa6   : > { %v241_v25 = vmul.f32 0.00390625, %v234_v22 }
  0xa8   : > { %v243_v29 = vsel %vm229_vm0, %v241_v25, 0.0 }
  0xa9   : > { %v239_v27 = vpop.xlane.xlu0 %238 }
  0xaa   : > { %v242_v28 = vmul.f32 0.00390625, %v239_v27 }
  0xac   : > { %v244_v30 = vsel %vm229_vm0, %v242_v28, 0.0 }
  0xad   : > { %v245_v32 = vadd.f32 %v244_v30, %v243_v29 }
  0xaf   : > { %v247_v33 = vmul.f32 0.5, %v245_v32 }
  0xb1   : > { %v255_v34 = vrot.slane %v247_v33, %v254_v31  ;;  %v326_v63 = vpop.permute.xlu0 %325 }
  0xb3   : > { %v257_v35 = vsub.f32 %v205_v7, %v255_v34  ;;  %v258_v36 = vsub.f32 %v206_v8, %v255_v34 }
  0xb5   : > { %v259_v37 = vmul.f32 %v257_v35, %v257_v35  ;;  %v260_v38 = vmul.f32 %v258_v36, %v258_v36 }
  0xb7   : > { %v269_v39 = vrot.slane %v259_v37, %v214_v6  ;;  %v277_v40 = vrot.slane %v260_v38, %v214_v6 }
  0xb9   : > { %v270_v41 = vcombine.high %v269_v39, %v269_v39  ;;  %v278_v42 = vcombine.high %v277_v40, %v277_v40  ;;  %v283_v43 = vsel %vm229_vm0, %v269_v39, 0.0  ;;  %v288_v47 = vsel %vm229_vm0, %v277_v40, 0.0 }
  0xbb   : > { %v284_v44 = vsel %vm229_vm0, %v270_v41, 0.0  ;;  %v289_v46 = vsel %vm229_vm0, %v278_v42, 0.0 }
  0xbc   : > { %v285_v45 = vadd.f32 %v284_v44, %v283_v43  ;;  %v290_v48 = vadd.f32 %v289_v46, %v288_v47 }
  0xbe   : > { %286 = vadd.xlane.f32.xlu1 %v285_v45 }
  0xc2   : > { %291 = vadd.xlane.f32.xlu1 %v290_v48 }
  0xd3   : > { %351 = vperm.xlu1 %484, %v465_v49  }
 0x14b   : > { %v287_v52 = vpop.xlane.xlu1 %286 }
 0x14c   : > { %v293_v53 = vmul.f32 0.00390625, %v287_v52 }
 0x14e   : > { %v295_v56 = vsel %vm229_vm0, %v293_v53, 0.0 }
 0x14f   : > { %v292_v54 = vpop.xlane.xlu1 %291 }
 0x150   : > { %v294_v55 = vmul.f32 0.00390625, %v292_v54 }
 0x152   : > { %v296_v57 = vsel %vm229_vm0, %v294_v55, 0.0 }
 0x153   : > { %v297_v58 = vadd.f32 %v296_v57, %v295_v56  ;;  %v352_v4 = vpop.permute.xlu1 %351 }
 0x155   : > { %v298_v59 = vmul.f32 0.5, %v297_v58 }
 0x157   : > { %v299_v60 = vadd.f32 1e-05, %v298_v59 }
 0x159   : > { %485 = vrsqrt.f32 %v299_v60 }
 0x163   : > { %v486_v61 = vpop.eup %485 }
 0x164   : > { %v308_v62 = vrot.slane %v486_v61, %v254_v31 }
 0x166   : > { %v311_v0 = vmul.f32 %v308_v62, %v258_v36  ;;  %v310_v1 = vmul.f32 %v308_v62, %v257_v35 }
 0x168   : > { %v333_v2 = vmul.f32 %v330_v50, %v311_v0  ;;  %v332_v3 = vmul.f32 %v326_v63, %v310_v1 }
 0x16a   : > { %v355_v5 = vadd.f32 %v352_v4, %v333_v2  ;;  %v354_v6 = vadd.f32 %v348_v51, %v332_v3 }
 0x16c   : > { %v467_v7 = vmul.f32 -1.442695, %v355_v5  ;;  %v466_v8 = vmul.f32 -1.442695, %v354_v6 }
 0x16e   : > { %487 = vpow2.f32 %v467_v7 }
 0x16f   : > { %489 = vpow2.f32 %v466_v8 }
 0x178   : > { %v488_v9 = vpop.eup %487 }
 0x179   : > { %v490_v10 = vpop.eup %489  ;;  %v363_v11 = vadd.f32 1.0, %v488_v9 }
 0x17a   : > { %v362_v12 = vadd.f32 1.0, %v490_v10 }
 0x17b   : > { %491 = vrcp.f32 %v363_v11 }
 0x17c   : > { %493 = vrcp.f32 %v362_v12 }
 0x185   : > { %v492_v13 = vpop.eup %491 }
 0x186   : > { %v494_v14 = vpop.eup %493  ;;  %v369_v15 = vmul.f32 %v492_v13, %v355_v5 }
 0x187   : > { %v368_v16 = vmul.f32 %v494_v14, %v354_v6 }
 0x188   : > { %371 = vst [vmem:[%s204_s27 + $0x4] sm:$0xf] %v369_v15 }
 0x189   : > { %370 = vst [vmem:[%s204_s27] sm:$0xf] %v368_v16 }
 0x18a PF: > { %s13_s12 = sadd.s32 1, %s501_s12  }
 0x18b   : > { %p10_p4 = scmp.ge.s32.totalorder %s13_s12, 6  }
 0x18d   :  { %12 = sbr.rel (!%p10_p4) target bundleno = 1 (0x1), region = 68 }

// kernel: mid_block_forward.17
= control target key start
LH: loop header
LB: loop body
LE: loop exit
PB: predicated region body
PF: predicated region fallthrough
CT: control target
= control target key end

     0   :  { %v291_v1 = vmov 0   ;;  %vm134_vm0 = vcmask 1043456   ;;  %vm130_vm1 = vcmask 588800   ;;  %s384_s1 = inlined_call_operand.vmem [shape: bf16[72,512], index: 1, kind: input, shape index: {}]   ;;  %s385_s2 = inlined_call_operand.vmem [shape: f32[8,1], index: 2, kind: input, shape index: {}]   ;;  %s386_s0 = inlined_call_operand.vmem [shape: bf16[8,72], index: 0, kind: input, shape index: {}]   ;;  %s387_s3 = inlined_call_operand.vmem [shape: f32[8,512], index: 3, kind: output, shape index: {}]  }
   0x1   :  { %v263_v0 = vld [vmem:[%s384_s1 + $0x4] ss:$16 sps:$4 sm:$0xff]   ;;  %179 = vmatprep.mubr.bf16.mxu0 %v291_v1  ;;  %220 = vmatprep.mubr.bf16.mxu1 %v291_v1  ;;  %v265_v2 = vld [vmem:[%s384_s1 + $0xc] ss:$16 sps:$4 sm:$0xff]   ;;  %v267_v3 = vld [vmem:[%s384_s1] ss:$16 sps:$4 sm:$0xff]  }
   0x2   :  { %262 = vset.pattern.permute.xlu0 %v291_v1  ;;  %147 = vmatprep.subr.bf16.mxu0 %v263_v0  ;;  %v268_v4 = vld [vmem:[%s384_s1 + $0x8] ss:$16 sps:$4 sm:$0xff]   ;;  %v269_v5 = vld [vmem:[%s384_s1 + $0x24] ss:$16 sps:$4 sm:$0xff]   ;;  %v271_v6 = vld [vmem:[%s384_s1 + $0x2c] ss:$16 sps:$4 sm:$0xff]  }
   0x3   :  { %188 = vmatprep.subr.bf16.mxu1 %v265_v2  ;;  %148 = vmatpush1.bf16.msra.mxu0 %v267_v3  ;;  %v273_v7 = vld [vmem:[%s384_s1 + $0x20] ss:$16 sps:$4 sm:$0xff]   ;;  %v274_v8 = vld [vmem:[%s384_s1 + $0x28] ss:$16 sps:$4 sm:$0xff]   ;;  %v275_v9 = vld [vmem:[%s384_s1 + $0x44] ss:$16 sps:$4 sm:$0xff]  }
   0x4   :  { %189 = vmatpush1.bf16.msra.mxu1 %v268_v4  ;;  %149 = vmatprep.subr.bf16.mxu0 %v269_v5  ;;  %v277_v10 = vld [vmem:[%s384_s1 + $0x4c] ss:$16 sps:$4 sm:$0xff]   ;;  %v279_v11 = vld [vmem:[%s384_s1 + $0x40] ss:$16 sps:$4 sm:$0xff]   ;;  %v280_v12 = vld [vmem:[%s384_s1 + $0x48] ss:$16 sps:$4 sm:$0xff]  }
   0x5   :  { %190 = vmatprep.subr.bf16.mxu1 %v271_v6  ;;  %v281_v13 = vld [vmem:[%s384_s1 + $0x64] ss:$16 sps:$4 sm:$0xff]   ;;  %v283_v14 = vld [vmem:[%s384_s1 + $0x6c] ss:$16 sps:$4 sm:$0xff]   ;;  %v285_v18 = vld [vmem:[%s384_s1 + $0x60] ss:$16 sps:$4 sm:$0xff]  }
   0x6   :  { %v31_v15 = vld [vmem:[%s384_s1 + $0x80] sm:$0xff]  ;;  %v32_v16 = vld [vmem:[%s384_s1 + $0x88] sm:$0xff] }
   0x7   :  { %150 = vmatpush1.bf16.msra.mxu0 %v273_v7  ;;  %v34_v17 = vld [vmem:[%s385_s2] sm:$0xff]  ;;  %v286_v19 = vld [vmem:[%s384_s1 + $0x68] ss:$16 sps:$4 sm:$0xff]   ;;  %v254_v20 = vcombine.high %v31_v15, %v31_v15  ;;  %v256_v21 = vcombine.high %v32_v16, %v32_v16  ;;  %v253_v22 = vcombine.low %v31_v15, %v31_v15  ;;  %v255_v23 = vcombine.low %v32_v16, %v32_v16 }
   0x8   :  { %191 = vmatpush1.bf16.msra.mxu1 %v274_v8  ;;  %151 = vmatprep.subr.bf16.mxu0 %v275_v9  ;;  %v33_v26 = vld [vmem:[%s386_s0] sm:$0xf] }
   0x9   :  { %192 = vmatprep.subr.bf16.mxu1 %v277_v10  ;;  %37 = vperm.xlu0 %262, %v34_v17   ;;  %v136_v24 = vsel %vm134_vm0, %v253_v22, 0  ;;  %v142_v25 = vsel %vm134_vm0, %v255_v23, 0 }
   0xb   :  { %152 = vmatpush1.bf16.msra.mxu0 %v279_v11 }
   0xc   :  { %193 = vmatpush1.bf16.msra.mxu1 %v280_v12  ;;  %153 = vmatprep.subr.bf16.mxu0 %v281_v13 }
   0xd   :  { %194 = vmatprep.subr.bf16.mxu1 %v283_v14 }
   0xf   :  { %154 = vmatpush1.bf16.msra.mxu0 %v285_v18 }
  0x10   :  { %195 = vmatpush1.bf16.msra.mxu1 %v286_v19  ;;  %257 = vmatprep.subr.msk.bf16.mxu0 %vm134_vm0, %v254_v20 }
  0x11   :  { %259 = vmatprep.subr.msk.bf16.mxu1 %vm134_vm0, %v256_v21 }
  0x13   :  { %156 = vmatpush1.bf16.msra.mxu0 %v136_v24 }
  0x14   :  { %197 = vmatpush1.bf16.msra.mxu1 %v142_v25 }
  0x16   :  { %258 = vmatmul.mubr.msk.bf16.vlgmr.msra.gmra.mrb[0].mxu0 %vm130_vm1, %v33_v26 }
  0x17   :  { %260 = vmatmul.mubr.msk.bf16.vlgmr.msra.gmra.mrb[0].mxu1 %vm130_vm1, %v33_v26 }
  0x88   :  { %v38_v27 = vpop.permute.xlu0 %37 }
  0xe9   :  { %v181_v28 = vpop.f32.mrb[0].mxu0 }
  0xea   :  { %v222_v29 = vpop.f32.mrb[0].mxu1  ;;  %v182_v30 = vadd.f32 %v181_v28, %v38_v27  ;;  %v183_v32 = vpop.f32.mrb[1].mxu0 }
  0xeb   :  { %v223_v31 = vadd.f32 %v222_v29, %v38_v27  ;;  %v224_v33 = vpop.f32.mrb[1].mxu1  ;;  %v184_v34 = vadd.f32 %v183_v32, %v38_v27  ;;  %v185_v36 = vpop.f32.mrb[2].mxu0 }
  0xec   :  { %v225_v35 = vadd.f32 %v224_v33, %v38_v27  ;;  %v226_v37 = vpop.f32.mrb[2].mxu1  ;;  %229 = vst [vmem:[%s387_s3] sm:$0xff] %v182_v30  ;;  %v186_v38 = vpop.f32.mrb[3].mxu0 }
  0xed   :  { %231 = vst [vmem:[%s387_s3 + $0x10] sm:$0xff] %v223_v31  ;;  %v227_v39 = vpop.f32.mrb[3].mxu1  ;;  %230 = vst [vmem:[%s387_s3 + $0x8] sm:$0xff] %v184_v34 }
  0xee   :  { %232 = vst [vmem:[%s387_s3 + $0x18] sm:$0xff] %v225_v35 }

// kernel: mid_block_forward.18
= control target key start
LH: loop header
LB: loop body
LE: loop exit
PB: predicated region body
PF: predicated region fallthrough
CT: control target
= control target key end

     0   :  { %v112_v0 = vmov 0.0   ;;  %vm113_vm0 = vmmov 0   ;;  %v114_v5 = vmov 0   ;;  %vm39_vm1 = vcmask 130048   ;;  %s150_s1 = inlined_call_operand.vmem [shape: f32[16,2], index: 1, kind: input, shape index: {}]   ;;  %s151_s2 = inlined_call_operand.vmem [shape: f32[8,1], index: 2, kind: input, shape index: {}]   ;;  %s152_s0 = inlined_call_operand.vmem [shape: bf16[8,16], index: 0, kind: input, shape index: {}]   ;;  %s153_s3 = inlined_call_operand.vmem [shape: f32[8,2], index: 3, kind: output, shape index: {}]  }
   0x1   :  { %94 = vmatprep.subr.bf16.mxu0 %v112_v0  ;;  %v15_v1 = vld [vmem:[%s150_s1] sm:$0xff]  ;;  %v16_v2 = vld [vmem:[%s150_s1 + $0x8] sm:$0xff]  ;;  %96 = vmatprep.mubr.msk.bf16.mxu0 %vm113_vm0, %v112_v0  ;;  %vm83_vm2 = vcmask 15360  }
   0x2   :  { %v89_v3 = vmul.f32 -1.442695, %v15_v1  ;;  %v90_v4 = vmul.f32 -1.442695, %v16_v2  ;;  %103 = vset.pattern.permute.xlu0 %v114_v5  ;;  %v33_v6 = vld [vmem:[%s151_s2] sm:$0xff] }
   0x3   :  { %36 = vperm.xlu0 %103, %v33_v6   ;;  %v32_v16 = vld [vmem:[%s152_s0] sm:$0xf] }
   0x4   :  { %104 = vpow2.f32 %v89_v3 }
   0x5   :  { %106 = vpow2.f32 %v90_v4 }
   0xe   :  { %v105_v7 = vpop.eup %104 }
   0xf   :  { %v107_v8 = vpop.eup %106  ;;  %v23_v9 = vadd.f32 1.0, %v105_v7 }
  0x10   :  { %v24_v10 = vadd.f32 1.0, %v107_v8 }
  0x11   :  { %108 = vrcp.f32 %v23_v9 }
  0x12   :  { %110 = vrcp.f32 %v24_v10 }
  0x1b   :  { %v109_v11 = vpop.eup %108 }
  0x1c   :  { %v111_v12 = vpop.eup %110  ;;  %v29_v13 = vmul.f32 %v109_v11, %v15_v1 }
  0x1d   :  { %v30_v14 = vmul.f32 %v111_v12, %v16_v2 }
  0x1f   :  { %v31_v15 = vpack.c.bf16 %v30_v14, %v29_v13 }
  0x21   :  { %95 = vmatpush3.bf16.msra.mxu0 %v31_v15 }
  0x24   :  { %97 = vmatmul.mubr.msk.bf16.vlgmr.msra.gmra.mrb[0].mxu0 %vm39_vm1, %v32_v16 }
  0x82   :  { %v37_v17 = vpop.permute.xlu0 %36 }
  0xf7   :  { %v77_v18 = vpop.f32.mrb[0].mxu0 }
  0xf8   :  { %v78_v19 = vadd.f32 %v77_v18, %v37_v17  ;;  %v98_v20 = vpop.f32.mrb[1].mxu0 }
  0xf9   :  { %v80_v21 = vpop.f32.mrb[2].mxu0 }
  0xfa   :  { %84 = vst.msk [vmem:[%s153_s3] sm:$0xff] %vm83_vm2, %v78_v19  ;;  %v99_v22 = vpop.f32.mrb[3].mxu0 }

// kernel: mid_block_forward.20
= control target key start
LH: loop header
LB: loop body
LE: loop exit
PB: predicated region body
PF: predicated region fallthrough
CT: control target
= control target key end

     0   :  { %s621_s15 = smov 0   ;;  %s674_s0 = inlined_call_operand.vmem [shape: f32[4,2,2,256], index: 0, kind: input, shape index: {}]   ;;  %s675_s1 = inlined_call_operand.vmem [shape: f32[4,2,1,1], index: 1, kind: input, shape index: {}]   ;;  %s676_s2 = inlined_call_operand.vmem [shape: f32[4,2,1,1], index: 2, kind: input, shape index: {}]   ;;  %s677_s3 = inlined_call_operand.vmem [shape: f32[4,2,2,1], index: 3, kind: input, shape index: {}]   ;;  %s678_s4 = inlined_call_operand.vmem [shape: f32[4,2,2,256], index: 4, kind: output, shape index: {}]  }
   0x1 LB: > { %s538_s16 = sadd.s32 4294967295, %s591_s15   ;;  %p542_p0 = scmp.ge.s32.totalorder %s591_s15, 1  ;;  %s591_s15 = sphi %s621_s15, %s14_s15  }
   0x2   : > { %p190_p1 = scmp.lt.s32.totalorder %s591_s15, 5 }
   0x4   : > { %p191_p2 = pnand %p542_p0, %p190_p1 }
   0x5   : > { %p229_p3 = scmp.lt.s32.totalorder (!%p191_p2), %s538_s16, 3  ;;  %v593_v0 = vmov (!%p191_p2), 0   ;;  %v594_v3 = vmov (!%p191_p2), 269488144   ;;  %v267_v5 = vlaneseq (!%p191_p2)  ;;  %v595_v8 = vmov (!%p191_p2), 1983009808  }
   0x6   : > { %194 = sbr.rel (%p191_p2) target bundleno = 522 (0x20a), region = 36  ;;  %573 = vset.pattern.permute.xlu0 (!%p191_p2), %v593_v0  ;;  %574 = vset.pattern.permute.xlu1 (!%p191_p2), %v593_v0  ;;  %v265_v4 = vunpack.c.l.s4 (!%p191_p2), %v594_v3  ;;  %v285_v9 = vunpack.c.l.s4 (!%p191_p2), %v595_v8  ;;  %vm304_vm0 = vcmask (!%p191_p2), 1041408  }
   0x7   : > { %v268_v7 = vshrl.u32 (!%p191_p2), %v267_v5, 7 }
   0x8   : > { %v266_v6 = vunpack.c.0.s8 (!%p191_p2), %v265_v4  ;;  %v286_v11 = vunpack.c.0.s8 (!%p191_p2), %v285_v9 }
   0xa   : > { %v636_v10 = vsub.s32 (!%p191_p2), %v266_v6, %v268_v7  ;;  %v289_v15 = vsub.s32 (!%p191_p2), %v286_v11, %v268_v7 }
   0xd   : > { %s680_s16 = smov (!%p229_p3, %s538_s16), 3 }
   0xe   : > { %s560_s17 = sshll.u32 %s680_s16, 2  ;;  %s559_s21 = sshll.u32 %s680_s16, 3 }
   0xf   : > { %s246_s20 = scalar_lea.vmem %s677_s3, %s560_s17  ;;  %s233_s24 = scalar_lea.vmem %s674_s0, %s559_s21 }
  0x10   : > { %v254_v1 = vld [vmem:[%s246_s20] sm:$0x3]  ;;  %v255_v2 = vld [vmem:[%s246_s20 + $0x2] sm:$0x3]  ;;  %v253_v18 = vld [vmem:[%s233_s24 + $0x4] sm:$0xf]  ;;  %s251_s8 = scalar_lea.vmem %s678_s4, %s559_s21 }
  0x11   : > { %258 = vperm.xlu0 %573, %v254_v1   ;;  %v252_v13 = vld [vmem:[%s233_s24] sm:$0xf]  ;;  %s545_s25 = sshll.u32 %s680_s16, 1 }
  0x12   : > { %s237_s28 = scalar_lea.vmem %s675_s1, %s545_s25  ;;  %s241_s5 = scalar_lea.vmem %s676_s2, %s545_s25 }
  0x13   : > { %v551_v31 = vld [vmem:[%s237_s28] ss:$0 sm:$0xff]  ;;  %v552_v32 = vld [vmem:[%s237_s28 + $0x1] ss:$0 sm:$0xff] }
  0x14   : > { %v553_v33 = vld [vmem:[%s241_s5] ss:$0 sm:$0xff]  ;;  %v554_v57 = vld [vmem:[%s241_s5 + $0x1] ss:$0 sm:$0xff] }
  0x15   : > { %262 = vperm.xlu0 %573, %v255_v2  }
  0x90   : > { %v259_v12 = vpop.permute.xlu0 %258 }
  0x91   : > { %v270_v14 = vrot.slane %v259_v12, %v636_v10 }
  0x93   : > { %v280_v16 = vadd.f32 %v270_v14, %v252_v13 }
  0x94   : > { %v263_v17 = vpop.permute.xlu0 %262 }
  0x95   : > { %v277_v19 = vrot.slane %v263_v17, %v636_v10  ;;  %v290_v20 = vrot.slane %v280_v16, %v289_v15 }
  0x97   : > { %v281_v21 = vadd.f32 %v277_v19, %v253_v18  ;;  %v291_v22 = vcombine.high %v290_v20, %v290_v20  ;;  %v305_v23 = vsel %vm304_vm0, %v290_v20, 0.0 }
  0x99   : > { %v306_v24 = vsel %vm304_vm0, %v291_v22, 0.0  ;;  %v298_v25 = vrot.slane %v281_v21, %v289_v15 }
  0x9a   : > { %v307_v26 = vadd.f32 %v306_v24, %v305_v23 }
  0x9b   : > { %v299_v27 = vcombine.high %v298_v25, %v298_v25  ;;  %v310_v28 = vsel %vm304_vm0, %v298_v25, 0.0 }
  0x9c   : > { %308 = vadd.xlane.f32.xlu1 %v307_v26 }
  0x9d   : > { %v311_v29 = vsel %vm304_vm0, %v299_v27, 0.0 }
  0x9e   : > { %v312_v30 = vadd.f32 %v311_v29, %v310_v28 }
  0xa0   : > { %313 = vadd.xlane.f32.xlu1 %v312_v30 }
  0xb1   : > { %400 = vperm.xlu1 %574, %v551_v31  }
  0xb5   : > { %404 = vperm.xlu1 %574, %v552_v32  }
  0xb9   : > { %422 = vperm.xlu1 %574, %v553_v33  }
 0x129   : > { %v309_v34 = vpop.xlane.xlu1 %308 }
 0x12a   : > { %v316_v35 = vmul.f32 0.00390625, %v309_v34 }
 0x12c   : > { %v318_v38 = vsel %vm304_vm0, %v316_v35, 0.0 }
 0x12d   : > { %v314_v36 = vpop.xlane.xlu1 %313 }
 0x12e   : > { %v317_v37 = vmul.f32 0.00390625, %v314_v36 }
 0x130   : > { %v319_v39 = vsel %vm304_vm0, %v317_v37, 0.0 }
 0x131   : > { %v320_v40 = vadd.f32 %v319_v39, %v318_v38  ;;  %v401_v58 = vpop.permute.xlu1 %400 }
 0x133   : > { %v322_v41 = vmul.f32 0.5, %v320_v40 }
 0x135   : > { %v330_v42 = vrot.slane %v322_v41, %v636_v10  ;;  %v405_v59 = vpop.permute.xlu1 %404 }
 0x137   : > { %v332_v43 = vsub.f32 %v280_v16, %v330_v42  ;;  %v333_v44 = vsub.f32 %v281_v21, %v330_v42 }
 0x139   : > { %v335_v45 = vmul.f32 %v333_v44, %v333_v44  ;;  %v334_v46 = vmul.f32 %v332_v43, %v332_v43  ;;  %v423_v60 = vpop.permute.xlu1 %422 }
 0x13b   : > { %v352_v47 = vrot.slane %v335_v45, %v289_v15  ;;  %v344_v48 = vrot.slane %v334_v46, %v289_v15 }
 0x13d   : > { %v353_v49 = vcombine.high %v352_v47, %v352_v47  ;;  %v345_v50 = vcombine.high %v344_v48, %v344_v48  ;;  %v363_v51 = vsel %vm304_vm0, %v352_v47, 0.0  ;;  %v358_v53 = vsel %vm304_vm0, %v344_v48, 0.0 }
 0x13f   : > { %v364_v52 = vsel %vm304_vm0, %v353_v49, 0.0  ;;  %v359_v54 = vsel %vm304_vm0, %v345_v50, 0.0 }
 0x140   : > { %v365_v55 = vadd.f32 %v364_v52, %v363_v51  ;;  %v360_v56 = vadd.f32 %v359_v54, %v358_v53 }
 0x142   : > { %366 = vadd.xlane.f32.xlu1 %v365_v55  ;;  %361 = vadd.xlane.f32.xlu0 %v360_v56 }
 0x153   : > { %426 = vperm.xlu1 %574, %v554_v57  }
 0x1cf   : > { %v362_v61 = vpop.xlane.xlu0 %361  ;;  %v367_v62 = vpop.xlane.xlu1 %366 }
 0x1d0   : > { %v368_v63 = vmul.f32 0.00390625, %v362_v61  ;;  %v369_v0 = vmul.f32 0.00390625, %v367_v62 }
 0x1d2   : > { %v370_v1 = vsel %vm304_vm0, %v368_v63, 0.0  ;;  %v371_v2 = vsel %vm304_vm0, %v369_v0, 0.0 }
 0x1d3   : > { %v372_v3 = vadd.f32 %v371_v2, %v370_v1  ;;  %v427_v13 = vpop.permute.xlu1 %426 }
 0x1d5   : > { %v373_v4 = vmul.f32 0.5, %v372_v3 }
 0x1d7   : > { %v374_v5 = vadd.f32 1e-05, %v373_v4 }
 0x1d9   : > { %575 = vrsqrt.f32 %v374_v5 }
 0x1e3   : > { %v576_v6 = vpop.eup %575 }
 0x1e4   : > { %v383_v7 = vrot.slane %v576_v6, %v636_v10 }
 0x1e6   : > { %v385_v8 = vmul.f32 %v383_v7, %v332_v43  ;;  %v386_v9 = vmul.f32 %v383_v7, %v333_v44 }
 0x1e8   : > { %v407_v11 = vmul.f32 %v401_v58, %v385_v8  ;;  %v408_v12 = vmul.f32 %v405_v59, %v386_v9 }
 0x1ea   : > { %v429_v14 = vadd.f32 %v423_v60, %v407_v11  ;;  %v430_v15 = vadd.f32 %v427_v13, %v408_v12 }
 0x1ec   : > { %v555_v16 = vmul.f32 -1.442695, %v429_v14  ;;  %v556_v17 = vmul.f32 -1.442695, %v430_v15 }
 0x1ee   : > { %577 = vpow2.f32 %v555_v16 }
 0x1ef   : > { %579 = vpow2.f32 %v556_v17 }
 0x1f8   : > { %v578_v18 = vpop.eup %577 }
 0x1f9   : > { %v580_v19 = vpop.eup %579  ;;  %v437_v20 = vadd.f32 1.0, %v578_v18 }
 0x1fa   : > { %v438_v21 = vadd.f32 1.0, %v580_v19 }
 0x1fb   : > { %581 = vrcp.f32 %v437_v20 }
 0x1fc   : > { %583 = vrcp.f32 %v438_v21 }
 0x205   : > { %v582_v22 = vpop.eup %581 }
 0x206   : > { %v584_v10 = vpop.eup %583  ;;  %v443_v23 = vmul.f32 %v582_v22, %v429_v14 }
 0x207   : > { %v444_v24 = vmul.f32 %v584_v10, %v430_v15 }
 0x208   : > { %445 = vst [vmem:[%s251_s8] sm:$0xf] %v443_v23 }
 0x209   : > { %446 = vst [vmem:[%s251_s8 + $0x4] sm:$0xf] %v444_v24 }
 0x20a PF: > { %s14_s15 = sadd.s32 1, %s591_s15  }
 0x20b   : > { %p11_p4 = scmp.ge.s32.totalorder %s14_s15, 6  }
 0x20d   :  { %13 = sbr.rel (!%p11_p4) target bundleno = 1 (0x1), region = 75 }

// kernel: mid_block_forward.19
= control target key start
LH: loop header
LB: loop body
LE: loop exit
PB: predicated region body
PF: predicated region fallthrough
CT: control target
= control target key end

     0   :  { %vm38_vm0 = vcmask 1043456   ;;  %v155_v2 = vmov 0   ;;  %vm34_vm1 = vcmask 64512   ;;  %s204_s1 = inlined_call_operand.vmem [shape: bf16[8,512], index: 1, kind: input, shape index: {}]   ;;  %s205_s2 = inlined_call_operand.vmem [shape: f32[8,1], index: 2, kind: input, shape index: {}]   ;;  %s206_s0 = inlined_call_operand.vmem [shape: bf16[8,8], index: 0, kind: input, shape index: {}]   ;;  %s207_s3 = inlined_call_operand.vmem [shape: f32[8,512], index: 3, kind: output, shape index: {}]  }
   0x1   :  { %v15_v0 = vld [vmem:[%s204_s1] sm:$0xff]  ;;  %v16_v1 = vld [vmem:[%s204_s1 + $0x8] sm:$0xff]  ;;  %83 = vmatprep.mubr.bf16.mxu0 %v155_v2  ;;  %124 = vmatprep.mubr.bf16.mxu1 %v155_v2 }
   0x2   :  { %v142_v3 = vcombine.high %v15_v0, %v15_v0  ;;  %v144_v4 = vcombine.high %v16_v1, %v16_v1  ;;  %v141_v5 = vcombine.low %v15_v0, %v15_v0  ;;  %v143_v6 = vcombine.low %v16_v1, %v16_v1  ;;  %150 = vset.pattern.permute.xlu0 %v155_v2  ;;  %v18_v7 = vld [vmem:[%s205_s2] sm:$0xff] }
   0x3   :  { %21 = vperm.xlu0 %150, %v18_v7   ;;  %v17_v10 = vld [vmem:[%s206_s0] sm:$0xf] }
   0x4   :  { %145 = vmatprep.subr.msk.bf16.mxu0 %vm38_vm0, %v142_v3  ;;  %147 = vmatprep.subr.msk.bf16.mxu1 %vm38_vm0, %v144_v4  ;;  %v40_v8 = vsel %vm38_vm0, %v141_v5, 0  ;;  %v46_v9 = vsel %vm38_vm0, %v143_v6, 0 }
   0x5   :  { %52 = vmatpush1.bf16.msra.mxu0 %v40_v8  ;;  %93 = vmatpush1.bf16.msra.mxu1 %v46_v9 }
   0x8   :  { %146 = vmatmul.mubr.msk.bf16.vlgmr.msra.gmra.mrb[0].mxu0 %vm34_vm1, %v17_v10  ;;  %148 = vmatmul.mubr.msk.bf16.vlgmr.msra.gmra.mrb[0].mxu1 %vm34_vm1, %v17_v10 }
  0x82   :  { %v22_v11 = vpop.permute.xlu0 %21 }
  0xdb   :  { %v85_v12 = vpop.f32.mrb[0].mxu0  ;;  %v126_v13 = vpop.f32.mrb[0].mxu1 }
  0xdc   :  { %v86_v14 = vadd.f32 %v85_v12, %v22_v11  ;;  %v127_v15 = vadd.f32 %v126_v13, %v22_v11  ;;  %v87_v16 = vpop.f32.mrb[1].mxu0  ;;  %v128_v17 = vpop.f32.mrb[1].mxu1 }
  0xdd   :  { %v88_v18 = vadd.f32 %v87_v16, %v22_v11  ;;  %v129_v19 = vadd.f32 %v128_v17, %v22_v11  ;;  %v89_v20 = vpop.f32.mrb[2].mxu0  ;;  %v130_v21 = vpop.f32.mrb[2].mxu1 }
  0xde   :  { %133 = vst [vmem:[%s207_s3] sm:$0xff] %v86_v14  ;;  %135 = vst [vmem:[%s207_s3 + $0x10] sm:$0xff] %v127_v15  ;;  %v90_v22 = vpop.f32.mrb[3].mxu0  ;;  %v131_v23 = vpop.f32.mrb[3].mxu1 }
  0xdf   :  { %134 = vst [vmem:[%s207_s3 + $0x8] sm:$0xff] %v88_v18  ;;  %136 = vst [vmem:[%s207_s3 + $0x18] sm:$0xff] %v129_v19 }

// kernel: mid_block_forward.21
= control target key start
LH: loop header
LB: loop body
LE: loop exit
PB: predicated region body
PF: predicated region fallthrough
CT: control target
= control target key end

     0   :  { %v302_v1 = vmov 0   ;;  %vm137_vm0 = vcmask 1043456   ;;  %vm133_vm1 = vcmask 588800   ;;  %s412_s1 = inlined_call_operand.vmem [shape: bf16[72,512], index: 1, kind: input, shape index: {}]   ;;  %s413_s2 = inlined_call_operand.vmem [shape: f32[8,1], index: 2, kind: input, shape index: {}]   ;;  %s414_s0 = inlined_call_operand.vmem [shape: bf16[8,72], index: 0, kind: input, shape index: {}]   ;;  %s415_s3 = inlined_call_operand.vmem [shape: f32[8,512], index: 3, kind: input, shape index: {}]   ;;  %s416_s4 = inlined_call_operand.vmem [shape: f32[8,512], index: 4, kind: output, shape index: {}]  }
   0x1   :  { %v274_v0 = vld [vmem:[%s412_s1 + $0x4] ss:$16 sps:$4 sm:$0xff]   ;;  %182 = vmatprep.mubr.bf16.mxu0 %v302_v1  ;;  %223 = vmatprep.mubr.bf16.mxu1 %v302_v1  ;;  %v276_v2 = vld [vmem:[%s412_s1 + $0xc] ss:$16 sps:$4 sm:$0xff]   ;;  %v278_v3 = vld [vmem:[%s412_s1] ss:$16 sps:$4 sm:$0xff]  }
   0x2   :  { %273 = vset.pattern.permute.xlu0 %v302_v1  ;;  %150 = vmatprep.subr.bf16.mxu0 %v274_v0  ;;  %v279_v4 = vld [vmem:[%s412_s1 + $0x8] ss:$16 sps:$4 sm:$0xff]   ;;  %v280_v5 = vld [vmem:[%s412_s1 + $0x24] ss:$16 sps:$4 sm:$0xff]   ;;  %v282_v6 = vld [vmem:[%s412_s1 + $0x2c] ss:$16 sps:$4 sm:$0xff]  }
   0x3   :  { %191 = vmatprep.subr.bf16.mxu1 %v276_v2  ;;  %151 = vmatpush1.bf16.msra.mxu0 %v278_v3  ;;  %v284_v7 = vld [vmem:[%s412_s1 + $0x20] ss:$16 sps:$4 sm:$0xff]   ;;  %v285_v8 = vld [vmem:[%s412_s1 + $0x28] ss:$16 sps:$4 sm:$0xff]   ;;  %v286_v9 = vld [vmem:[%s412_s1 + $0x44] ss:$16 sps:$4 sm:$0xff]  }
   0x4   :  { %192 = vmatpush1.bf16.msra.mxu1 %v279_v4  ;;  %152 = vmatprep.subr.bf16.mxu0 %v280_v5  ;;  %v288_v10 = vld [vmem:[%s412_s1 + $0x4c] ss:$16 sps:$4 sm:$0xff]   ;;  %v290_v11 = vld [vmem:[%s412_s1 + $0x40] ss:$16 sps:$4 sm:$0xff]   ;;  %v291_v12 = vld [vmem:[%s412_s1 + $0x48] ss:$16 sps:$4 sm:$0xff]  }
   0x5   :  { %193 = vmatprep.subr.bf16.mxu1 %v282_v6  ;;  %v292_v13 = vld [vmem:[%s412_s1 + $0x64] ss:$16 sps:$4 sm:$0xff]   ;;  %v294_v14 = vld [vmem:[%s412_s1 + $0x6c] ss:$16 sps:$4 sm:$0xff]   ;;  %v296_v18 = vld [vmem:[%s412_s1 + $0x60] ss:$16 sps:$4 sm:$0xff]  }
   0x6   :  { %v34_v15 = vld [vmem:[%s412_s1 + $0x80] sm:$0xff]  ;;  %v35_v16 = vld [vmem:[%s412_s1 + $0x88] sm:$0xff]  ;;  %v234_v31 = vld [vmem:[%s415_s3 + $0x10] sm:$0xff] }
   0x7   :  { %153 = vmatpush1.bf16.msra.mxu0 %v284_v7  ;;  %v37_v17 = vld [vmem:[%s413_s2] sm:$0xff]  ;;  %v297_v19 = vld [vmem:[%s412_s1 + $0x68] ss:$16 sps:$4 sm:$0xff]   ;;  %v265_v20 = vcombine.high %v34_v15, %v34_v15  ;;  %v267_v21 = vcombine.high %v35_v16, %v35_v16  ;;  %v264_v22 = vcombine.low %v34_v15, %v34_v15  ;;  %v266_v23 = vcombine.low %v35_v16, %v35_v16 }
   0x8   :  { %194 = vmatpush1.bf16.msra.mxu1 %v285_v8  ;;  %154 = vmatprep.subr.bf16.mxu0 %v286_v9  ;;  %v36_v26 = vld [vmem:[%s414_s0] sm:$0xf]  ;;  %v233_v35 = vld [vmem:[%s415_s3 + $0x8] sm:$0xff]  ;;  %v235_v37 = vld [vmem:[%s415_s3 + $0x18] sm:$0xff] }
   0x9   :  { %195 = vmatprep.subr.bf16.mxu1 %v288_v10  ;;  %40 = vperm.xlu0 %273, %v37_v17   ;;  %v139_v24 = vsel %vm137_vm0, %v264_v22, 0  ;;  %v145_v25 = vsel %vm137_vm0, %v266_v23, 0  ;;  %v232_v29 = vld [vmem:[%s415_s3] sm:$0xff] }
   0xb   :  { %155 = vmatpush1.bf16.msra.mxu0 %v290_v11 }
   0xc   :  { %196 = vmatpush1.bf16.msra.mxu1 %v291_v12  ;;  %156 = vmatprep.subr.bf16.mxu0 %v292_v13 }
   0xd   :  { %197 = vmatprep.subr.bf16.mxu1 %v294_v14 }
   0xf   :  { %157 = vmatpush1.bf16.msra.mxu0 %v296_v18 }
  0x10   :  { %198 = vmatpush1.bf16.msra.mxu1 %v297_v19  ;;  %268 = vmatprep.subr.msk.bf16.mxu0 %vm137_vm0, %v265_v20 }
  0x11   :  { %270 = vmatprep.subr.msk.bf16.mxu1 %vm137_vm0, %v267_v21 }
  0x13   :  { %159 = vmatpush1.bf16.msra.mxu0 %v139_v24 }
  0x14   :  { %200 = vmatpush1.bf16.msra.mxu1 %v145_v25 }
  0x16   :  { %269 = vmatmul.mubr.msk.bf16.vlgmr.msra.gmra.mrb[0].mxu0 %vm133_vm1, %v36_v26 }
  0x17   :  { %271 = vmatmul.mubr.msk.bf16.vlgmr.msra.gmra.mrb[0].mxu1 %vm133_vm1, %v36_v26 }
  0x88   :  { %v41_v27 = vpop.permute.xlu0 %40 }
  0xe9   :  { %v184_v28 = vpop.f32.mrb[0].mxu0 }
  0xea   :  { %v225_v30 = vpop.f32.mrb[0].mxu1  ;;  %v185_v32 = vadd.f32 %v184_v28, %v41_v27  ;;  %v186_v34 = vpop.f32.mrb[1].mxu0 }
  0xeb   :  { %v226_v33 = vadd.f32 %v225_v30, %v41_v27  ;;  %v227_v36 = vpop.f32.mrb[1].mxu1  ;;  %v187_v38 = vadd.f32 %v186_v34, %v41_v27  ;;  %v188_v40 = vpop.f32.mrb[2].mxu0 }
  0xec   :  { %v228_v39 = vadd.f32 %v227_v36, %v41_v27  ;;  %v229_v41 = vpop.f32.mrb[2].mxu1  ;;  %v236_v42 = vadd.f32 %v232_v29, %v185_v32  ;;  %v189_v44 = vpop.f32.mrb[3].mxu0 }
  0xed   :  { %v238_v43 = vadd.f32 %v234_v31, %v226_v33  ;;  %v230_v45 = vpop.f32.mrb[3].mxu1  ;;  %v237_v46 = vadd.f32 %v233_v35, %v187_v38 }
  0xee   :  { %v239_v47 = vadd.f32 %v235_v37, %v228_v39  ;;  %240 = vst [vmem:[%s416_s4] sm:$0xff] %v236_v42 }
  0xef   :  { %242 = vst [vmem:[%s416_s4 + $0x10] sm:$0xff] %v238_v43  ;;  %241 = vst [vmem:[%s416_s4 + $0x8] sm:$0xff] %v237_v46 }
  0xf0   :  { %243 = vst [vmem:[%s416_s4 + $0x18] sm:$0xff] %v239_v47 }

// kernel: mid_block_forward.22
= control target key start
LH: loop header
LB: loop body
LE: loop exit
PB: predicated region body
PF: predicated region fallthrough
CT: control target
= control target key end

     0   :  { %s502_s12 = smov 0   ;;  %s549_s0 = inlined_call_operand.vmem [shape: f32[4,2,2,256], index: 0, kind: input, shape index: {}]   ;;  %s550_s1 = inlined_call_operand.vmem [shape: f32[4,2,1,1], index: 1, kind: input, shape index: {}]   ;;  %s551_s2 = inlined_call_operand.vmem [shape: f32[4,2,1,1], index: 2, kind: input, shape index: {}]   ;;  %s552_s3 = inlined_call_operand.vmem [shape: f32[4,2,2,256], index: 3, kind: output, shape index: {}]  }
   0x1 LB: > { %s437_s13 = sadd.s32 4294967295, %s477_s12   ;;  %p441_p0 = scmp.ge.s32.totalorder %s477_s12, 1  ;;  %s477_s12 = sphi %s502_s12, %s13_s12  }
   0x2   : > { %p155_p1 = scmp.lt.s32.totalorder %s477_s12, 5 }
   0x4   : > { %p156_p2 = pnand %p441_p0, %p155_p1 }
   0x5   : > { %p187_p3 = scmp.lt.s32.totalorder (!%p156_p2), %s437_s13, 3  ;;  %v212_v0 = vlaneseq (!%p156_p2)  ;;  %v479_v1 = vmov (!%p156_p2), 1983009808   ;;  %v480_v3 = vmov (!%p156_p2), 0   ;;  %vm229_vm0 = vcmask (!%p156_p2), 1041408  }
   0x6   : > { %159 = sbr.rel (%p156_p2) target bundleno = 365 (0x16d), region = 32  ;;  %v210_v2 = vunpack.c.l.s4 (!%p156_p2), %v479_v1  ;;  %468 = vset.pattern.permute.xlu1 (!%p156_p2), %v480_v3  ;;  %467 = vset.pattern.permute.xlu0 (!%p156_p2), %v480_v3  ;;  %v481_v23 = vmov (!%p156_p2), 269488144  }
   0x7   : > { %v213_v4 = vshrl.u32 (!%p156_p2), %v212_v0, 7  ;;  %v250_v24 = vunpack.c.l.s4 (!%p156_p2), %v481_v23 }
   0x8   : > { %v211_v5 = vunpack.c.0.s8 (!%p156_p2), %v210_v2 }
   0x9   : > { %v251_v26 = vunpack.c.0.s8 (!%p156_p2), %v250_v24 }
   0xa   : > { %v214_v6 = vsub.s32 (!%p156_p2), %v211_v5, %v213_v4 }
   0xb   : > { %v254_v31 = vsub.s32 (!%p156_p2), %v251_v26, %v213_v4 }
   0xd   : > { %s554_s13 = smov (!%p187_p3, %s437_s13), 3 }
   0xe   : > { %s454_s14 = sshll.u32 %s554_s13, 3  ;;  %s444_s15 = sshll.u32 %s554_s13, 1 }
   0xf   : > { %s191_s18 = scalar_lea.vmem %s549_s0, %s454_s14  ;;  %s195_s21 = scalar_lea.vmem %s550_s1, %s444_s15 }
  0x10   : > { %v205_v7 = vld [vmem:[%s191_s18] sm:$0xf]  ;;  %v206_v8 = vld [vmem:[%s191_s18 + $0x4] sm:$0xf]  ;;  %s525_s24 = scalar_lea.vmem %s551_s2, %s444_s15  ;;  %s204_s27 = scalar_lea.vmem %s552_s3, %s454_s14 }
  0x11   : > { %v449_v9 = vld [vmem:[%s195_s21 + $0x1] ss:$0 sm:$0xff]  ;;  %v215_v10 = vrot.slane %v205_v7, %v214_v6  ;;  %v223_v11 = vrot.slane %v206_v8, %v214_v6  ;;  %v450_v12 = vld [vmem:[%s525_s24] ss:$0 sm:$0xff] }
  0x12   : > { %329 = vperm.xlu1 %468, %v449_v9   ;;  %v448_v21 = vld [vmem:[%s195_s21] ss:$0 sm:$0xff]  ;;  %v451_v49 = vld [vmem:[%s525_s24 + $0x1] ss:$0 sm:$0xff] }
  0x13   : > { %v216_v13 = vcombine.high %v215_v10, %v215_v10  ;;  %v230_v14 = vsel %vm229_vm0, %v215_v10, 0.0  ;;  %v224_v15 = vcombine.high %v223_v11, %v223_v11  ;;  %v235_v17 = vsel %vm229_vm0, %v223_v11, 0.0 }
  0x15   : > { %v231_v16 = vsel %vm229_vm0, %v216_v13, 0.0  ;;  %v236_v18 = vsel %vm229_vm0, %v224_v15, 0.0 }
  0x16   : > { %347 = vperm.xlu1 %468, %v450_v12   ;;  %v232_v19 = vadd.f32 %v231_v16, %v230_v14  ;;  %v237_v20 = vadd.f32 %v236_v18, %v235_v17 }
  0x18   : > { %233 = vadd.xlane.f32.xlu0 %v232_v19 }
  0x1c   : > { %238 = vadd.xlane.f32.xlu0 %v237_v20 }
  0x32   : > { %325 = vperm.xlu0 %467, %v448_v21  }
  0x91   : > { %v330_v50 = vpop.permute.xlu1 %329 }
  0x95   : > { %v348_v51 = vpop.permute.xlu1 %347 }
  0xa5   : > { %v234_v22 = vpop.xlane.xlu0 %233 }
  0xa6   : > { %v241_v25 = vmul.f32 0.00390625, %v234_v22 }
  0xa8   : > { %v243_v29 = vsel %vm229_vm0, %v241_v25, 0.0 }
  0xa9   : > { %v239_v27 = vpop.xlane.xlu0 %238 }
  0xaa   : > { %v242_v28 = vmul.f32 0.00390625, %v239_v27 }
  0xac   : > { %v244_v30 = vsel %vm229_vm0, %v242_v28, 0.0 }
  0xad   : > { %v245_v32 = vadd.f32 %v244_v30, %v243_v29 }
  0xaf   : > { %v247_v33 = vmul.f32 0.5, %v245_v32 }
  0xb1   : > { %v255_v34 = vrot.slane %v247_v33, %v254_v31  ;;  %v326_v63 = vpop.permute.xlu0 %325 }
  0xb3   : > { %v257_v35 = vsub.f32 %v205_v7, %v255_v34  ;;  %v258_v36 = vsub.f32 %v206_v8, %v255_v34 }
  0xb5   : > { %v259_v37 = vmul.f32 %v257_v35, %v257_v35  ;;  %v260_v38 = vmul.f32 %v258_v36, %v258_v36 }
  0xb7   : > { %v269_v39 = vrot.slane %v259_v37, %v214_v6  ;;  %v277_v40 = vrot.slane %v260_v38, %v214_v6 }
  0xb9   : > { %v270_v41 = vcombine.high %v269_v39, %v269_v39  ;;  %v278_v42 = vcombine.high %v277_v40, %v277_v40  ;;  %v283_v43 = vsel %vm229_vm0, %v269_v39, 0.0  ;;  %v288_v47 = vsel %vm229_vm0, %v277_v40, 0.0 }
  0xbb   : > { %v284_v44 = vsel %vm229_vm0, %v270_v41, 0.0  ;;  %v289_v46 = vsel %vm229_vm0, %v278_v42, 0.0 }
  0xbc   : > { %v285_v45 = vadd.f32 %v284_v44, %v283_v43  ;;  %v290_v48 = vadd.f32 %v289_v46, %v288_v47 }
  0xbe   : > { %286 = vadd.xlane.f32.xlu1 %v285_v45 }
  0xc2   : > { %291 = vadd.xlane.f32.xlu1 %v290_v48 }
  0xd3   : > { %351 = vperm.xlu1 %468, %v451_v49  }
 0x14b   : > { %v287_v52 = vpop.xlane.xlu1 %286 }
 0x14c   : > { %v293_v53 = vmul.f32 0.00390625, %v287_v52 }
 0x14e   : > { %v295_v56 = vsel %vm229_vm0, %v293_v53, 0.0 }
 0x14f   : > { %v292_v54 = vpop.xlane.xlu1 %291 }
 0x150   : > { %v294_v55 = vmul.f32 0.00390625, %v292_v54 }
 0x152   : > { %v296_v57 = vsel %vm229_vm0, %v294_v55, 0.0 }
 0x153   : > { %v297_v58 = vadd.f32 %v296_v57, %v295_v56  ;;  %v352_v4 = vpop.permute.xlu1 %351 }
 0x155   : > { %v298_v59 = vmul.f32 0.5, %v297_v58 }
 0x157   : > { %v299_v60 = vadd.f32 1e-05, %v298_v59 }
 0x159   : > { %469 = vrsqrt.f32 %v299_v60 }
 0x163   : > { %v470_v61 = vpop.eup %469 }
 0x164   : > { %v308_v62 = vrot.slane %v470_v61, %v254_v31 }
 0x166   : > { %v311_v0 = vmul.f32 %v308_v62, %v258_v36  ;;  %v310_v1 = vmul.f32 %v308_v62, %v257_v35 }
 0x168   : > { %v333_v2 = vmul.f32 %v330_v50, %v311_v0  ;;  %v332_v3 = vmul.f32 %v326_v63, %v310_v1 }
 0x16a   : > { %v355_v5 = vadd.f32 %v352_v4, %v333_v2  ;;  %v354_v6 = vadd.f32 %v348_v51, %v332_v3 }
 0x16c   : > { %357 = vst [vmem:[%s204_s27 + $0x4] sm:$0xf] %v355_v5  ;;  %356 = vst [vmem:[%s204_s27] sm:$0xf] %v354_v6 }
 0x16d PF: > { %s13_s12 = sadd.s32 1, %s477_s12  }
 0x16e   : > { %p10_p4 = scmp.ge.s32.totalorder %s13_s12, 6  }
 0x170   :  { %12 = sbr.rel (!%p10_p4) target bundleno = 1 (0x1), region = 68 }

// kernel: mid_block_forward.23
= control target key start
LH: loop header
LB: loop body
LE: loop exit
PB: predicated region body
PF: predicated region fallthrough
CT: control target
= control target key end

     0   :  { %vm63_vm0 = vcmask 1043456   ;;  %v215_v2 = vmov 0   ;;  %vm56_vm1 = vcmask 64512   ;;  %s293_s1 = inlined_call_operand.vmem [shape: bf16[8,512], index: 1, kind: input, shape index: {}]   ;;  %s294_s0 = inlined_call_operand.vmem [shape: bf16[24,8], index: 0, kind: input, shape index: {}]   ;;  %s295_s2 = inlined_call_operand.vmem [shape: f32[24,1], index: 2, kind: input, shape index: {}]   ;;  %s296_s3 = inlined_call_operand.vmem [shape: f32[24,512], index: 3, kind: output, shape index: {}]  }
   0x1   :  { %v15_v0 = vld [vmem:[%s293_s1] sm:$0xff]  ;;  %v16_v1 = vld [vmem:[%s293_s1 + $0x8] sm:$0xff]  ;;  %108 = vmatprep.mubr.bf16.mxu0 %v215_v2  ;;  %159 = vmatprep.mubr.bf16.mxu1 %v215_v2  ;;  %v22_v11 = vld [vmem:[%s295_s2 + $0x10] sm:$0xff] }
   0x2   :  { %v197_v3 = vcombine.high %v15_v0, %v15_v0  ;;  %v199_v4 = vcombine.high %v16_v1, %v16_v1  ;;  %v196_v5 = vcombine.low %v15_v0, %v15_v0  ;;  %v198_v6 = vcombine.low %v16_v1, %v16_v1  ;;  %207 = vset.pattern.permute.xlu0 %v215_v2  ;;  %v20_v7 = vld [vmem:[%s295_s2] sm:$0xff]  ;;  %v21_v12 = vld [vmem:[%s295_s2 + $0x8] sm:$0xff] }
   0x3   :  { %208 = vset.pattern.permute.xlu1 %v215_v2  ;;  %v213_v10 = vld [vmem:[%s294_s0] sm:$0xff]   ;;  %25 = vperm.xlu0 %207, %v20_v7   ;;  %v214_v13 = vld [vmem:[%s294_s0 + $0x8] ss:$0 sps:$4 sm:$0xff]  }
   0x4   :  { %200 = vmatprep.subr.msk.bf16.mxu0 %vm63_vm0, %v197_v3  ;;  %203 = vmatprep.subr.msk.bf16.mxu1 %vm63_vm0, %v199_v4  ;;  %v65_v8 = vsel %vm63_vm0, %v196_v5, 0  ;;  %v71_v9 = vsel %vm63_vm0, %v198_v6, 0 }
   0x5   :  { %77 = vmatpush1.bf16.msra.mxu0 %v65_v8  ;;  %128 = vmatpush1.bf16.msra.mxu1 %v71_v9 }
   0x6   :  { %35 = vperm.xlu1 %208, %v22_v11  }
   0x7   :  { %30 = vperm.xlu0 %207, %v21_v12  }
   0x8   :  { %201 = vmatmul.mubr.msk.bf16.vlgmr.msra.gmra.mrb[0].mxu0 %vm56_vm1, %v213_v10  ;;  %204 = vmatmul.mubr.msk.bf16.vlgmr.msra.gmra.mrb[0].mxu1 %vm56_vm1, %v213_v10 }
   0x9   :  { %118 = vmatprep.mubr.bf16.mxu0 %v215_v2  ;;  %169 = vmatprep.mubr.bf16.mxu1 %v215_v2 }
  0x10   :  { %202 = vmatmul.mubr.msk.bf16.gmra.mrb[4].mxu0 %vm56_vm1, %v214_v13  ;;  %205 = vmatmul.mubr.msk.bf16.gmra.mrb[4].mxu1 %vm56_vm1, %v214_v13 }
  0x82   :  { %v26_v14 = vpop.permute.xlu0 %25 }
  0x85   :  { %v36_v32 = vpop.permute.xlu1 %35 }
  0x86   :  { %v31_v15 = vpop.permute.xlu0 %30 }
  0xdb   :  { %v110_v16 = vpop.f32.mrb[0].mxu0  ;;  %v161_v17 = vpop.f32.mrb[0].mxu1 }
  0xdc   :  { %v111_v18 = vadd.f32 %v110_v16, %v26_v14  ;;  %v162_v19 = vadd.f32 %v161_v17, %v26_v14  ;;  %v112_v20 = vpop.f32.mrb[1].mxu0  ;;  %v163_v21 = vpop.f32.mrb[1].mxu1 }
  0xdd   :  { %v113_v22 = vadd.f32 %v112_v20, %v26_v14  ;;  %v164_v23 = vadd.f32 %v163_v21, %v26_v14  ;;  %v114_v24 = vpop.f32.mrb[2].mxu0  ;;  %v165_v25 = vpop.f32.mrb[2].mxu1 }
  0xde   :  { %178 = vst [vmem:[%s296_s3] sm:$0xff] %v111_v18  ;;  %180 = vst [vmem:[%s296_s3 + $0x10] sm:$0xff] %v162_v19  ;;  %v115_v26 = vadd.f32 %v114_v24, %v31_v15  ;;  %v166_v27 = vadd.f32 %v165_v25, %v31_v15  ;;  %v116_v28 = vpop.f32.mrb[3].mxu0  ;;  %v167_v29 = vpop.f32.mrb[3].mxu1 }
  0xdf   :  { %179 = vst [vmem:[%s296_s3 + $0x8] sm:$0xff] %v113_v22  ;;  %181 = vst [vmem:[%s296_s3 + $0x18] sm:$0xff] %v164_v23  ;;  %v117_v30 = vadd.f32 %v116_v28, %v31_v15  ;;  %v168_v31 = vadd.f32 %v167_v29, %v31_v15 }
  0xe0   :  { %182 = vst [vmem:[%s296_s3 + $0x20] sm:$0xff] %v115_v26  ;;  %184 = vst [vmem:[%s296_s3 + $0x30] sm:$0xff] %v166_v27 }
  0xe1   :  { %183 = vst [vmem:[%s296_s3 + $0x28] sm:$0xff] %v117_v30  ;;  %185 = vst [vmem:[%s296_s3 + $0x38] sm:$0xff] %v168_v31 }
  0xe3   :  { %v120_v33 = vpop.f32.mrb[4].mxu0  ;;  %v171_v34 = vpop.f32.mrb[4].mxu1 }
  0xe4   :  { %v121_v35 = vadd.f32 %v120_v33, %v36_v32  ;;  %v172_v36 = vadd.f32 %v171_v34, %v36_v32  ;;  %v122_v37 = vpop.f32.mrb[5].mxu0  ;;  %v173_v38 = vpop.f32.mrb[5].mxu1 }
  0xe5   :  { %v123_v39 = vadd.f32 %v122_v37, %v36_v32  ;;  %v174_v40 = vadd.f32 %v173_v38, %v36_v32  ;;  %v124_v41 = vpop.f32.mrb[6].mxu0  ;;  %v175_v42 = vpop.f32.mrb[6].mxu1 }
  0xe6   :  { %186 = vst [vmem:[%s296_s3 + $0x40] sm:$0xff] %v121_v35  ;;  %188 = vst [vmem:[%s296_s3 + $0x50] sm:$0xff] %v172_v36  ;;  %v125_v43 = vpop.f32.mrb[7].mxu0  ;;  %v176_v44 = vpop.f32.mrb[7].mxu1 }
  0xe7   :  { %187 = vst [vmem:[%s296_s3 + $0x48] sm:$0xff] %v123_v39  ;;  %189 = vst [vmem:[%s296_s3 + $0x58] sm:$0xff] %v174_v40 }

// kernel: mid_block_forward.24
= control target key start
LH: loop header
LB: loop body
LE: loop exit
PB: predicated region body
PF: predicated region fallthrough
CT: control target
= control target key end

     0   :  { %s992_s12 = smov 0   ;;  %s994_s13 = smov 0   ;;  %s1125_s0 = inlined_call_operand.vmem [shape: bf16[4,4,256], index: 0, kind: input, shape index: {}]   ;;  %s1126_s1 = inlined_call_operand.vmem [shape: bf16[4,4,256], index: 1, kind: input, shape index: {}]   ;;  %s1127_s2 = inlined_call_operand.vmem [shape: bf16[4,4,256], index: 2, kind: input, shape index: {}]   ;;  %s1128_s3 = inlined_call_operand.vmem [shape: f32[4,4,256], index: 3, kind: output, shape index: {}]  }
   0x1   :  { %s996_s14 = smov 0   ;;  %s998_s15 = smov 0  }
   0x2   :  { %s1000_s16 = smov 0   ;;  %s1002_s17 = smov 0  }
   0x3   :  { %s1004_s18 = smov 0  }
   0x4 LB: > { %s25_s19 = sadd.s32 1, %s954_s15  ;;  %s28_s20 = sadd.s32 1, %s958_s16  ;;  %s966_s18 = sphi %s1004_s18, %s13_s18   ;;  %s962_s17 = sphi %s1002_s17, %s1134_s17   ;;  %s958_s16 = sphi %s1000_s16, %s1133_s16   ;;  %s954_s15 = sphi %s998_s15, %s1132_s15   ;;  %s950_s14 = sphi %s996_s14, %s1131_s14   ;;  %s946_s13 = sphi %s994_s13, %s1130_s13   ;;  %s942_s12 = sphi %s992_s12, %s1129_s12  }
   0x5   : > { %p26_p0 = scmp.ge.s32.totalorder %s25_s19, 2  ;;  %p737_p1 = scmp.ge.s32.totalorder %s966_s18, 1 }
   0x6   : > { %p193_p2 = scmp.lt.s32.totalorder %s966_s18, 17  ;;  %s32_s21 = sadd.s32 1, %s962_s17 }
   0x7   : > { %s1136_s19 = smov (%p26_p0, %s25_s19), 0  ;;  %s1138_s20 = smov (!%p26_p0, %s28_s20), %s958_s16 }
   0x8   : > { %p194_p3 = pnand %p737_p1, %p193_p2  ;;  %p30_p4 = scmp.ge.s32.totalorder %s1138_s20, 2 }
   0x9   : > { %p239_p6 = scmp.lt.s32.totalorder (!%p194_p3), %s950_s14, 3  ;;  %p241_p7 = scmp.lt.s32.totalorder (!%p194_p3), %s946_s13, 1 }
   0xa   : > { %s1140_s20 = smov (%p30_p4, %s1138_s20), 0  ;;  %s1142_s21 = smov (!%p30_p4, %s32_s21), %s962_s17 }
   0xb   : > { %p34_p5 = scmp.ge.s32.totalorder %s1142_s21, 4  ;;  %197 = sbr.rel (%p194_p3) target bundleno = 675 (0x2a3), region = 32 }
   0xc   : > { %p249_p8 = scmp.lt.s32.totalorder (!%p194_p3), %s942_s12, 1  ;;  %p746_p9 = scmp.ne.s32.totalorder (!%p194_p3), %s942_s12, 0 }
   0xd   : > { %s1144_s21 = smov (%p34_p5, %s1142_s21), 0 }
  0x12   : > { %s1146_s14 = smov (!%p239_p6, %s950_s14), 3  ;;  %s1148_s13 = smov (!%p241_p7, %s946_s13), 1 }
  0x13   : > { %s738_s22 = sshll.u32 %s1146_s14, 1  ;;  %v968_v0 = vmov (!%p746_p9), -inf   ;;  %v969_v1 = vmov (!%p746_p9), 0.0  }
  0x14   : > { %s244_s23 = sadd.s32 %s738_s22, %s1148_s13  ;;  %277 = vst [vmem:[#allocation2] sm:$0x1] (!%p746_p9), %v968_v0  ;;  %278 = vst [vmem:[#allocation3] sm:$0x1] (!%p746_p9), %v969_v1 }
  0x15   : > { %s739_s24 = sshll.u32 %s244_s23, 1  ;;  %s745_s25 = sshll.u32 %s244_s23, 2  ;;  %279 = vst [vmem:[#allocation4] sm:$0xf] (!%p746_p9), %v969_v1 }
  0x16   : > { %s246_s28 = scalar_lea.vmem %s1125_s0, %s739_s24  ;;  %s1043_s4 = scalar_lea.vmem %s1128_s3, %s745_s25 }
  0x17   : > { %s250_s5 = scalar_select %p249_p8, %s942_s12, 1 }
  0x18   : > { %276 = sbr.rel (%p746_p9) target bundleno = 31 (0x1f), region = 36 }
  0x19   : > { %s252_s6 = sadd.s32 %s738_s22, %s250_s5 }
  0x1a   : > { %s741_s7 = sshll.u32 %s252_s6, 1 }
  0x1b   : > { %s254_s10 = scalar_lea.vmem %s1126_s1, %s741_s7  ;;  %s1052_s14 = scalar_lea.vmem %s1127_s2, %s741_s7 }
  0x1f PF: > { %v282_v2 = vld [vmem:[%s254_s10] sm:$0x3]  ;;  %vm325_vm0 = vcmask 1041408   ;;  %vm300_vm1 = vcmask 31744   ;;  %v970_v14 = vmov 0.0   ;;  %vm971_vm2 = vmmov 0  }
  0x20   : > { %v280_v3 = vld [vmem:[%s246_s28] sm:$0x3]  ;;  %284 = vxpose.xlu0.c.b16.start.end [1/1] (short) %v282_v2, 128  ;;  %794 = vmatprep.subr.bf16.mxu1 %v970_v14  ;;  %v453_v48 = vlaneseq  ;;  %p755_p10 = scmp.ne.s32.totalorder %s942_s12, 1 }
  0x21   : > { %v281_v4 = vmul.bf16 1056980736, %v280_v3  ;;  %810 = vmatprep.mubr.msk.bf16.mxu1 %vm971_vm2, %v970_v14  ;;  %v426_v53 = vld [vmem:[#allocation2] sm:$0x1] }
  0x22   : > { %v454_v51 = vshrl.u32 %v453_v48, 7 }
  0x23   : > { %814 = vmatprep.subr.msk.bf16.mxu0 %vm325_vm0, %v281_v4  ;;  %v327_v5 = vsel %vm325_vm0, %v281_v4, 0 }
  0x24   : > { %777 = vmatpush3.bf16.msra.mxu0 %v327_v5  ;;  %v1083_v55 = vsub.s32 0, %v454_v51 }
  0x86   : > { %v292_v6 = vpop.trf.xlu0 }
  0x87   : > { %778 = vmatprep.mubr.msk.bf16.mxu0 %vm300_vm1, %v292_v6 }
  0x8a   : > { %v293_v7 = vpop.trf.xlu0 }
  0x8b   : > { %779 = vmatmul.mubr.msk.bf16.vlgmr.msra.gmra.mrb[0].mxu0 %vm300_vm1, %v293_v7 }
  0x8e   : > { %v294_v8 = vpop.trf.xlu0 }
  0x8f   : > { %782 = vmatprep.mubr.msk.bf16.mxu0 %vm300_vm1, %v294_v8 }
  0x92   : > { %v295_v9 = vpop.trf.xlu0 }
  0x93   : > { %783 = vmatmul.mubr.msk.bf16.gmra.mrb[4].mxu0 %vm300_vm1, %v295_v9 }
  0x96   : > { %v296_v10 = vpop.trf.xlu0 }
  0x97   : > { %786 = vmatprep.mubr.msk.bf16.mxu0 %vm300_vm1, %v296_v10 }
  0x9a   : > { %v297_v11 = vpop.trf.xlu0 }
  0x9b   : > { %787 = vmatmul.mubr.msk.bf16.gmra.mrb[8].mxu0 %vm300_vm1, %v297_v11 }
  0x9e   : > { %v298_v12 = vpop.trf.xlu0 }
  0x9f   : > { %790 = vmatprep.mubr.msk.bf16.mxu0 %vm300_vm1, %v298_v12 }
  0xa2   : > { %v299_v13 = vpop.trf.xlu0 }
  0xa3   : > { %791 = vmatmul.mubr.msk.bf16.gmra.mrb[12].mxu0 %vm300_vm1, %v299_v13 }
 0x15e   : > { %v780_v15 = vpop.f32.mrb[0].mxu0 }
 0x15f   : > { %v363_v16 = vpop.f32.mrb[1].mxu0 }
 0x160   : > { %v781_v17 = vpop.f32.mrb[2].mxu0 }
 0x161   : > { %v366_v18 = vpop.f32.mrb[3].mxu0 }
 0x166   : > { %v1065_v19 = vpop.f32.mrb[4].mxu0 }
 0x167   : > { %v429_v20 = vmax.f32 %v780_v15, %v1065_v19  ;;  %v379_v21 = vpop.f32.mrb[5].mxu0 }
 0x168   : > { %v427_v22 = vmax.f32 %v363_v16, %v379_v21  ;;  %v1068_v23 = vpop.f32.mrb[6].mxu0 }
 0x169   : > { %v430_v24 = vmax.f32 %v781_v17, %v1068_v23  ;;  %v382_v25 = vpop.f32.mrb[7].mxu0 }
 0x16a   : > { %v428_v26 = vmax.f32 %v366_v18, %v382_v25 }
 0x16e   : > { %v1071_v27 = vpop.f32.mrb[8].mxu0 }
 0x16f   : > { %v433_v28 = vmax.f32 %v429_v20, %v1071_v27  ;;  %v395_v29 = vpop.f32.mrb[9].mxu0 }
 0x170   : > { %v431_v30 = vmax.f32 %v427_v22, %v395_v29  ;;  %v1074_v31 = vpop.f32.mrb[10].mxu0 }
 0x171   : > { %v434_v32 = vmax.f32 %v430_v24, %v1074_v31  ;;  %v398_v33 = vpop.f32.mrb[11].mxu0 }
 0x172   : > { %v432_v34 = vmax.f32 %v428_v26, %v398_v33 }
 0x176   : > { %v1077_v35 = vpop.f32.mrb[12].mxu0 }
 0x177   : > { %v437_v36 = vmax.f32 %v433_v28, %v1077_v35  ;;  %v411_v37 = vpop.f32.mrb[13].mxu0 }
 0x178   : > { %v435_v38 = vmax.f32 %v431_v30, %v411_v37  ;;  %v1080_v39 = vpop.f32.mrb[14].mxu0 }
 0x179   : > { %v438_v40 = vmax.f32 %v434_v32, %v1080_v39  ;;  %v414_v41 = vpop.f32.mrb[15].mxu0 }
 0x17a   : > { %v436_v42 = vmax.f32 %v432_v34, %v414_v41 }
 0x17b   : > { %v440_v43 = vmax.f32 %v437_v36, %v438_v40 }
 0x17c   : > { %v439_v44 = vmax.f32 %v435_v38, %v436_v42 }
 0x17e   : > { %v441_v45 = vmax.f32 %v439_v44, %v440_v43 }
 0x180   : > { %v442_v46 = vrot.slane %v441_v45, 4 }
 0x182   : > { %v443_v47 = vmax.f32 %v441_v45, %v442_v46 }
 0x184   : > { %v444_v49 = vrot.slane %v443_v47, 2 }
 0x186   : > { %v445_v50 = vmax.f32 %v443_v47, %v444_v49 }
 0x188   : > { %v446_v52 = vrot.slane %v445_v50, 1 }
 0x18a   : > { %v447_v54 = vmax.f32 %v445_v50, %v446_v52 }
 0x18c   : > { %v448_v56 = vmax.f32 %v426_v53, %v447_v54 }
 0x18e   : > { %v456_v57 = vrot.slane %v448_v56, %v1083_v55  ;;  %589 = vst [vmem:[#allocation2] sm:$0x1] %v448_v56  ;;  %v449_v24 = vsub.f32 %v426_v53, %v448_v56 }
 0x190   : > { %v458_v58 = vsub.f32 %v363_v16, %v456_v57  ;;  %v459_v59 = vsub.f32 %v366_v18, %v456_v57  ;;  %v460_v60 = vsub.f32 %v780_v15, %v456_v57  ;;  %v461_v61 = vsub.f32 %v781_v17, %v456_v57 }
 0x191   : > { %v462_v62 = vsub.f32 %v379_v21, %v456_v57  ;;  %v463_v63 = vsub.f32 %v382_v25, %v456_v57  ;;  %v464_v0 = vsub.f32 %v1065_v19, %v456_v57  ;;  %v465_v1 = vsub.f32 %v1068_v23, %v456_v57 }
 0x192   : > { %v466_v2 = vsub.f32 %v395_v29, %v456_v57  ;;  %v467_v3 = vsub.f32 %v398_v33, %v456_v57  ;;  %v468_v4 = vsub.f32 %v1071_v27, %v456_v57  ;;  %v469_v5 = vsub.f32 %v1074_v31, %v456_v57 }
 0x193   : > { %v470_v6 = vsub.f32 %v411_v37, %v456_v57  ;;  %v471_v7 = vsub.f32 %v414_v41, %v456_v57  ;;  %v472_v8 = vsub.f32 %v1077_v35, %v456_v57  ;;  %v474_v9 = vmul.f32 1.442695, %v458_v58 }
 0x194   : > { %v476_v10 = vmul.f32 1.442695, %v459_v59  ;;  %v478_v11 = vmul.f32 1.442695, %v460_v60  ;;  %v480_v12 = vmul.f32 1.442695, %v461_v61  ;;  %v473_v13 = vsub.f32 %v1080_v39, %v456_v57 }
 0x195   : > { %876 = vpow2.f32 %v474_v9  ;;  %v482_v15 = vmul.f32 1.442695, %v462_v62  ;;  %v484_v16 = vmul.f32 1.442695, %v463_v63  ;;  %v486_v17 = vmul.f32 1.442695, %v464_v0 }
 0x196   : > { %878 = vpow2.f32 %v476_v10  ;;  %v488_v18 = vmul.f32 1.442695, %v465_v1  ;;  %v490_v19 = vmul.f32 1.442695, %v466_v2  ;;  %v492_v20 = vmul.f32 1.442695, %v467_v3 }
 0x197   : > { %880 = vpow2.f32 %v478_v11  ;;  %v494_v21 = vmul.f32 1.442695, %v468_v4  ;;  %v496_v22 = vmul.f32 1.442695, %v469_v5  ;;  %v498_v23 = vmul.f32 1.442695, %v470_v6 }
 0x198   : > { %882 = vpow2.f32 %v480_v12  ;;  %v500_v25 = vmul.f32 1.442695, %v471_v7  ;;  %v502_v27 = vmul.f32 1.442695, %v472_v8  ;;  %v504_v29 = vmul.f32 1.442695, %v473_v13 }
 0x199   : > { %884 = vpow2.f32 %v482_v15  ;;  %v450_v33 = vmul.f32 1.442695, %v449_v24  ;;  %v283_v8 = vld [vmem:[%s1052_s14] sm:$0x3] }
 0x19a   : > { %886 = vpow2.f32 %v484_v16  ;;  %v506_v12 = vld [vmem:[#allocation3] sm:$0x1] }
 0x19b   : > { %888 = vpow2.f32 %v486_v17 }
 0x19c   : > { %890 = vpow2.f32 %v488_v18  ;;  %v531_v18 = vld [vmem:[#allocation4] sm:$0xf] }
 0x19d   : > { %892 = vpow2.f32 %v490_v19 }
 0x19e   : > { %894 = vpow2.f32 %v492_v20 }
 0x19f   : > { %v877_v26 = vpop.eup %876  ;;  %896 = vpow2.f32 %v494_v21 }
 0x1a0   : > { %v879_v28 = vpop.eup %878  ;;  %898 = vpow2.f32 %v496_v22 }
 0x1a1   : > { %v881_v30 = vpop.eup %880  ;;  %900 = vpow2.f32 %v498_v23  ;;  %v508_v31 = vadd.f32 %v879_v28, %v877_v26  ;;  %v539_v32 = vpack.c.bf16 %v879_v28, %v877_v26 }
 0x1a2   : > { %v883_v34 = vpop.eup %882  ;;  %902 = vpow2.f32 %v500_v25 }
 0x1a3   : > { %v885_v35 = vpop.eup %884  ;;  %904 = vpow2.f32 %v502_v27  ;;  %v509_v36 = vadd.f32 %v881_v30, %v508_v31  ;;  %795 = vmatpush3.bf16.msra.mxu1 %v539_v32  ;;  %v540_v37 = vpack.c.bf16 %v883_v34, %v881_v30 }
 0x1a4   : > { %v887_v38 = vpop.eup %886  ;;  %796 = vmatprep.subr.bf16.mxu1 %v970_v14  ;;  %906 = vpow2.f32 %v504_v29 }
 0x1a5   : > { %v889_v39 = vpop.eup %888  ;;  %v510_v40 = vadd.f32 %v883_v34, %v509_v36  ;;  %v541_v41 = vpack.c.bf16 %v887_v38, %v885_v35  ;;  %908 = vpow2.f32 %v450_v33 }
 0x1a6   : > { %v891_v42 = vpop.eup %890 }
 0x1a7   : > { %v893_v43 = vpop.eup %892  ;;  %v511_v44 = vadd.f32 %v885_v35, %v510_v40  ;;  %797 = vmatpush3.bf16.msra.mxu1 %v540_v37  ;;  %v542_v45 = vpack.c.bf16 %v891_v42, %v889_v39 }
 0x1a8   : > { %v895_v46 = vpop.eup %894  ;;  %798 = vmatprep.subr.bf16.mxu1 %v970_v14 }
 0x1a9   : > { %v897_v47 = vpop.eup %896  ;;  %v512_v48 = vadd.f32 %v887_v38, %v511_v44  ;;  %v543_v49 = vpack.c.bf16 %v895_v46, %v893_v43 }
 0x1aa   : > { %v899_v50 = vpop.eup %898 }
 0x1ab   : > { %v901_v51 = vpop.eup %900  ;;  %v513_v52 = vadd.f32 %v889_v39, %v512_v48  ;;  %799 = vmatpush3.bf16.msra.mxu1 %v541_v41  ;;  %v544_v53 = vpack.c.bf16 %v899_v50, %v897_v47 }
 0x1ac   : > { %v903_v54 = vpop.eup %902  ;;  %800 = vmatprep.subr.bf16.mxu1 %v970_v14 }
 0x1ad   : > { %v905_v56 = vpop.eup %904  ;;  %v514_v57 = vadd.f32 %v891_v42, %v513_v52  ;;  %v545_v58 = vpack.c.bf16 %v903_v54, %v901_v51 }
 0x1ae   : > { %v907_v59 = vpop.eup %906 }
 0x1af   : > { %v909_v60 = vpop.eup %908  ;;  %v515_v61 = vadd.f32 %v893_v43, %v514_v57  ;;  %801 = vmatpush3.bf16.msra.mxu1 %v542_v45  ;;  %v546_v62 = vpack.c.bf16 %v907_v59, %v905_v56 }
 0x1b0   : > { %802 = vmatprep.subr.bf16.mxu1 %v970_v14  ;;  %v536_v63 = vrot.slane %v909_v60, %v1083_v55  ;;  %v507_v16 = vmul.f32 %v909_v60, %v506_v12 }
 0x1b1   : > { %v516_v0 = vadd.f32 %v895_v46, %v515_v61 }
 0x1b2   : > { %v538_v19 = vmul.f32 %v536_v63, %v531_v18 }
 0x1b3   : > { %v517_v1 = vadd.f32 %v897_v47, %v516_v0  ;;  %803 = vmatpush3.bf16.msra.mxu1 %v543_v49 }
 0x1b4   : > { %804 = vmatprep.subr.bf16.mxu1 %v970_v14 }
 0x1b5   : > { %v518_v2 = vadd.f32 %v899_v50, %v517_v1 }
 0x1b7   : > { %v519_v3 = vadd.f32 %v901_v51, %v518_v2  ;;  %805 = vmatpush3.bf16.msra.mxu1 %v544_v53 }
 0x1b8   : > { %806 = vmatprep.subr.bf16.mxu1 %v970_v14 }
 0x1b9   : > { %v520_v4 = vadd.f32 %v903_v54, %v519_v3 }
 0x1bb   : > { %v521_v5 = vadd.f32 %v905_v56, %v520_v4  ;;  %807 = vmatpush3.bf16.msra.mxu1 %v545_v58 }
 0x1bc   : > { %808 = vmatprep.subr.bf16.mxu1 %v970_v14 }
 0x1bd   : > { %v522_v6 = vadd.f32 %v907_v59, %v521_v5 }
 0x1bf   : > { %v523_v7 = vrot.slane %v522_v6, 4  ;;  %809 = vmatpush3.bf16.msra.mxu1 %v546_v62 }
 0x1c1   : > { %v524_v9 = vadd.f32 %v523_v7, %v522_v6 }
 0x1c2   : > { %811 = vmatmul.mubr.bf16.vlgmr.msra.gmra.mrb[0].mxu1 %v283_v8 }
 0x1c3   : > { %v525_v10 = vrot.slane %v524_v9, 2 }
 0x1c5   : > { %v526_v11 = vadd.f32 %v525_v10, %v524_v9 }
 0x1c7   : > { %v527_v13 = vrot.slane %v526_v11, 1 }
 0x1c9   : > { %v528_v15 = vadd.f32 %v527_v13, %v526_v11 }
 0x1cb   : > { %v529_v17 = vadd.f32 %v528_v15, %v507_v16 }
 0x1cd   : > { %530 = vst [vmem:[#allocation3] sm:$0x1] %v529_v17 }
 0x1d4   : > { %v595_v24 = vld [vmem:[#allocation3] sm:$0x1] (!%p755_p10) }
 0x1d5   : > { %910 = vrcp.f32 (!%p755_p10), %v595_v24 }
 0x1df   : > { %v911_v25 = vpop.eup (!%p755_p10), %910 }
 0x1e0   : > { %v601_v27 = vrot.slane (!%p755_p10), %v911_v25, %v1083_v55 }
 0x292   : > { %593 = sbr.rel (%p755_p10) target bundleno = 675 (0x2a3), region = 40 }
 0x295   : > { %v581_v20 = vpop.f32.mrb[0].mxu1 }
 0x296   : > { %v587_v21 = vadd.f32 %v581_v20, %v538_v19  ;;  %v812_v22 = vpop.f32.mrb[1].mxu1 }
 0x297   : > { %v584_v14 = vpop.f32.mrb[2].mxu1 }
 0x298   : > { %588 = vst [vmem:[#allocation4] sm:$0xf] %v587_v21  ;;  %v813_v23 = vpop.f32.mrb[3].mxu1 }
 0x29f   : > { %v594_v26 = vld [vmem:[#allocation4] sm:$0xf] }
 0x2a0   : > { %v603_v28 = vmul.f32 %v601_v27, %v594_v26 }
 0x2a2   : > { %604 = vst [vmem:[%s1043_s4] sm:$0xf] %v603_v28 }
 0x2a3 PF: > { %s13_s18 = sadd.s32 1, %s966_s18   ;;  %s1129_s12 = smov %s954_s15 }
 0x2a4   : > { %p10_p11 = scmp.ge.s32.totalorder %s13_s18, 18   ;;  %s1130_s13 = smov %s958_s16 }
 0x2a5   : > { %s1131_s14 = smov %s962_s17  ;;  %s1132_s15 = smov %s1136_s19 }
 0x2a6   : > { %s1133_s16 = smov %s1140_s20  ;;  %s1134_s17 = smov %s1144_s21 }
 0x2a7   :  { %12 = sbr.rel (!%p10_p11) target bundleno = 4 (0x4), region = 76 }

// kernel: mid_block_forward.25
= control target key start
LH: loop header
LB: loop body
LE: loop exit
PB: predicated region body
PF: predicated region fallthrough
CT: control target
= control target key end

     0   :  { %vm41_vm0 = vcmask 1043456   ;;  %v166_v2 = vmov 0   ;;  %vm37_vm1 = vcmask 64512   ;;  %s232_s1 = inlined_call_operand.vmem [shape: bf16[8,512], index: 1, kind: input, shape index: {}]   ;;  %s233_s2 = inlined_call_operand.vmem [shape: f32[8,1], index: 2, kind: input, shape index: {}]   ;;  %s234_s0 = inlined_call_operand.vmem [shape: bf16[8,8], index: 0, kind: input, shape index: {}]   ;;  %s235_s3 = inlined_call_operand.vmem [shape: f32[8,512], index: 3, kind: input, shape index: {}]   ;;  %s236_s4 = inlined_call_operand.vmem [shape: f32[8,512], index: 4, kind: output, shape index: {}]  }
   0x1   :  { %v18_v0 = vld [vmem:[%s232_s1] sm:$0xff]  ;;  %v19_v1 = vld [vmem:[%s232_s1 + $0x8] sm:$0xff]  ;;  %86 = vmatprep.mubr.bf16.mxu0 %v166_v2  ;;  %127 = vmatprep.mubr.bf16.mxu1 %v166_v2  ;;  %v138_v15 = vld [vmem:[%s235_s3 + $0x10] sm:$0xff] }
   0x2   :  { %v153_v3 = vcombine.high %v18_v0, %v18_v0  ;;  %v155_v4 = vcombine.high %v19_v1, %v19_v1  ;;  %v152_v5 = vcombine.low %v18_v0, %v18_v0  ;;  %v154_v6 = vcombine.low %v19_v1, %v19_v1  ;;  %161 = vset.pattern.permute.xlu0 %v166_v2  ;;  %v21_v7 = vld [vmem:[%s233_s2] sm:$0xff]  ;;  %v137_v19 = vld [vmem:[%s235_s3 + $0x8] sm:$0xff]  ;;  %v139_v21 = vld [vmem:[%s235_s3 + $0x18] sm:$0xff] }
   0x3   :  { %24 = vperm.xlu0 %161, %v21_v7   ;;  %v20_v10 = vld [vmem:[%s234_s0] sm:$0xf] }
   0x4   :  { %156 = vmatprep.subr.msk.bf16.mxu0 %vm41_vm0, %v153_v3  ;;  %158 = vmatprep.subr.msk.bf16.mxu1 %vm41_vm0, %v155_v4  ;;  %v43_v8 = vsel %vm41_vm0, %v152_v5, 0  ;;  %v49_v9 = vsel %vm41_vm0, %v154_v6, 0  ;;  %v136_v13 = vld [vmem:[%s235_s3] sm:$0xff] }
   0x5   :  { %55 = vmatpush1.bf16.msra.mxu0 %v43_v8  ;;  %96 = vmatpush1.bf16.msra.mxu1 %v49_v9 }
   0x8   :  { %157 = vmatmul.mubr.msk.bf16.vlgmr.msra.gmra.mrb[0].mxu0 %vm37_vm1, %v20_v10  ;;  %159 = vmatmul.mubr.msk.bf16.vlgmr.msra.gmra.mrb[0].mxu1 %vm37_vm1, %v20_v10 }
  0x82   :  { %v25_v11 = vpop.permute.xlu0 %24 }
  0xdb   :  { %v88_v12 = vpop.f32.mrb[0].mxu0  ;;  %v129_v14 = vpop.f32.mrb[0].mxu1 }
  0xdc   :  { %v89_v16 = vadd.f32 %v88_v12, %v25_v11  ;;  %v130_v17 = vadd.f32 %v129_v14, %v25_v11  ;;  %v90_v18 = vpop.f32.mrb[1].mxu0  ;;  %v131_v20 = vpop.f32.mrb[1].mxu1 }
  0xdd   :  { %v91_v22 = vadd.f32 %v90_v18, %v25_v11  ;;  %v132_v23 = vadd.f32 %v131_v20, %v25_v11  ;;  %v92_v24 = vpop.f32.mrb[2].mxu0  ;;  %v133_v25 = vpop.f32.mrb[2].mxu1 }
  0xde   :  { %v140_v26 = vadd.f32 %v136_v13, %v89_v16  ;;  %v142_v27 = vadd.f32 %v138_v15, %v130_v17  ;;  %v93_v28 = vpop.f32.mrb[3].mxu0  ;;  %v134_v29 = vpop.f32.mrb[3].mxu1 }
  0xdf   :  { %v141_v30 = vadd.f32 %v137_v19, %v91_v22  ;;  %v143_v31 = vadd.f32 %v139_v21, %v132_v23 }
  0xe0   :  { %144 = vst [vmem:[%s236_s4] sm:$0xff] %v140_v26  ;;  %146 = vst [vmem:[%s236_s4 + $0x10] sm:$0xff] %v142_v27 }
  0xe1   :  { %145 = vst [vmem:[%s236_s4 + $0x8] sm:$0xff] %v141_v30  ;;  %147 = vst [vmem:[%s236_s4 + $0x18] sm:$0xff] %v143_v31 }

</bundles_post_ra>
